<compile_context>
chip_gen: v5e
topology: v5e:2x2
jax: 0.10.0
libtpu: 0.0.40
codegen_flags: <defaults>
</compile_context>

<pallas_src>
import functools
import math

import jax
import jax.numpy as jnp
import numpy as np
from jax import lax
from jax.experimental import pallas as pl
from jax.experimental.pallas import tpu as pltpu


# ----------------------------------------------------------------------------
# kernel mus / sigmas (identical to TK.kernel_mus / TK.kernel_sigmas)
# ----------------------------------------------------------------------------
def kernel_mus(n_kernels):
    l_mu = [1.0]
    if n_kernels == 1:
        return l_mu
    bin_size = 2.0 / (n_kernels - 1)
    l_mu.append(1 - bin_size / 2)
    for i in range(1, n_kernels - 1):
        l_mu.append(l_mu[i] - bin_size)
    return l_mu


def kernel_sigmas(n_kernels):
    bin_size = 2.0 / (n_kernels - 1)
    l_sigma = [0.0001]
    if n_kernels == 1:
        return l_sigma
    l_sigma += [0.5 * bin_size] * (n_kernels - 1)
    return l_sigma


# ----------------------------------------------------------------------------
# Pallas kernel: cosine matrix + Gaussian kernel pooling (the TK hot path)
# Processes TB batch elements per grid step.
# ----------------------------------------------------------------------------
def tk_core_kernel(q_emb_ref, q_ctx_ref, q_mask_ref,
                   d_emb_ref, d_ctx_ref, d_mask_col_ref, d_mask_row_ref,
                   inv_dl_ref, out_ref, *, mus, sigmas, factorize):
    K = len(mus)
    qm = q_mask_ref[...]            # (TB, Lq, 1)
    dmc = d_mask_col_ref[...]       # (TB, Ld, 1)
    dmr = d_mask_row_ref[...]       # (TB, 1, Ld)
    w_mean = inv_dl_ref[...] * qm   # (TB, Lq, 1) : 0.01/(doc_len+1) * q-mask

    # masked 0.5*(emb + ctx) mixing, vectorized over the whole block (VPU)
    q = (0.5 * (q_emb_ref[...] * qm) + 0.5 * q_ctx_ref[...]) * qm
    d = (0.5 * (d_emb_ref[...] * dmc) + 0.5 * d_ctx_ref[...]) * dmc

    # L2 normalization via rsqrt (EUP).  Masked rows are exactly 0, so the
    # cosine rows/cols of padded tokens are exactly 0 (same as masking cos).
    qn = q * lax.rsqrt(jnp.sum(q * q, axis=-1, keepdims=True) + 1e-26)
    dn = d * lax.rsqrt(jnp.sum(d * d, axis=-1, keepdims=True) + 1e-26)

    # batched cosine matrices on the MXU: (TB, Lq, Ld), f32 accumulation
    cos = jnp.einsum('bqd,bkd->bqk', qn, dn,
                     preferred_element_type=jnp.float32)

    pk_cols = [None] * K
    pkm_cols = [None] * K

    def reduce_kernel(h_masked, k):
        # h_masked: (TB, Lq, Ld) kernel values with the doc mask already applied
        pkq = jnp.sum(h_masked, axis=-1, keepdims=True)               # (TB, Lq, 1)
        lpk = jnp.log2(jnp.maximum(pkq, 1e-10)) * 0.01
        pk_cols[k] = jnp.sum(lpk * qm, axis=1, keepdims=True)          # (TB, 1, 1)
        pkm_cols[k] = jnp.sum(pkq * w_mean, axis=1, keepdims=True)     # (TB, 1, 1)

    # exact-match kernel (mu=1, sigma=1e-4): keep its own exp, f32 all the way
    c0 = 1.0 / (2.0 * sigmas[0] ** 2)
    reduce_kernel(jnp.exp(-c0 * jnp.square(cos - mus[0])) * dmr, 0)

    if K > 1:
        c = 1.0 / (2.0 * sigmas[1] ** 2)
        bin_size = (mus[1] - mus[2]) if K > 2 else 0.0
        same_sigma = all(abs(s - sigmas[1]) < 1e-12 for s in sigmas[1:])
        evenly = all(abs((mus[k] - mus[k + 1]) - bin_size) < 1e-9
                     for k in range(1, K - 1))
        # chain stays in normal f32 range only if the anchor exp does not
        # underflow at |cos - mu_anchor| <= 1 + bin/2 (true for typical K<=11)
        anchor_safe = c * (1.0 + 0.5 * bin_size) ** 2 < 80.0

        if factorize and K > 2 and same_sigma and evenly and anchor_safe:
            # shared-sigma factorization: 3 exps (anchor + two ratio maps)
            # instead of K-1; remaining kernels are VPU multiply chains.
            a = 1 + (K - 1) // 2                        # middle regular kernel
            s_const = math.exp(-2.0 * c * bin_size * bin_size)
            xa = cos - mus[a]
            g_a = jnp.exp(-c * jnp.square(xa)) * dmr    # doc mask folded once
            r_dn = jnp.exp((-2.0 * c * bin_size) * xa - c * bin_size * bin_size)
            r_up = jnp.exp((2.0 * c * bin_size) * xa - c * bin_size * bin_size)
            reduce_kernel(g_a, a)
            h = g_a                                     # mu decreasing
            for m, k in enumerate(range(a + 1, K)):
                h = h * r_dn if m == 0 else h * r_dn * (s_const ** m)
                reduce_kernel(h, k)
            h = g_a                                     # mu increasing
            for m, k in enumerate(range(a - 1, 0, -1)):
                h = h * r_up if m == 0 else h * r_up * (s_const ** m)
                reduce_kernel(h, k)
        else:
            for k in range(1, K):
                ck = 1.0 / (2.0 * sigmas[k] ** 2)
                reduce_kernel(jnp.exp(-ck * jnp.square(cos - mus[k])) * dmr, k)

    # single lane-dense fused output slab: [pk | pkm] -> (TB, 1, 2K)
    out_ref[...] = jnp.concatenate(pk_cols + pkm_cols, axis=-1)


def tk_kernel_pooling(q_emb, q_ctx, q_mask, d_emb, d_ctx, d_mask, mus, sigmas,
                      block_b=None, factorize=True):
    B, Lq, D = q_emb.shape
    Ld = d_emb.shape[1]
    K = len(mus)

    # batch tile: whole batch if small, else multiples of 8 (sublane friendly)
    if block_b is None:
        block_b = B if B <= 8 else 8
    Bp = ((B + block_b - 1) // block_b) * block_b
    if Bp != B:  # padded rows are fully masked -> contribute zeros, sliced off
        pad3 = [(0, Bp - B), (0, 0), (0, 0)]
        q_emb, q_ctx = jnp.pad(q_emb, pad3), jnp.pad(q_ctx, pad3)
        d_emb, d_ctx = jnp.pad(d_emb, pad3), jnp.pad(d_ctx, pad3)
        q_mask = jnp.pad(q_mask, [(0, Bp - B), (0, 0)])
        d_mask = jnp.pad(d_mask, [(0, Bp - B), (0, 0)])

    q_mask_col = q_mask[:, :, None]                       # (Bp, Lq, 1)
    d_mask_col = d_mask[:, :, None]                       # (Bp, Ld, 1)
    d_mask_row = d_mask[:, None, :]                       # (Bp, 1, Ld)
    # doc_len reduction hoisted out of the kernel; 0.01 folded in
    inv_dl = (0.01 / (jnp.sum(d_mask, axis=1) + 1.0))[:, None, None]  # (Bp,1,1)

    kernel = functools.partial(
        tk_core_kernel,
        mus=tuple(float(m) for m in mus),
        sigmas=tuple(float(s) for s in sigmas),
        factorize=factorize)

    out = pl.pallas_call(
        kernel,
        out_shape=jax.ShapeDtypeStruct((Bp, 1, 2 * K), jnp.float32),
        grid=(Bp // block_b,),
        in_specs=[
            pl.BlockSpec((block_b, Lq, D), lambda b: (b, 0, 0)),
            pl.BlockSpec((block_b, Lq, D), lambda b: (b, 0, 0)),
            pl.BlockSpec((block_b, Lq, 1), lambda b: (b, 0, 0)),
            pl.BlockSpec((block_b, Ld, D), lambda b: (b, 0, 0)),
            pl.BlockSpec((block_b, Ld, D), lambda b: (b, 0, 0)),
            pl.BlockSpec((block_b, Ld, 1), lambda b: (b, 0, 0)),
            pl.BlockSpec((block_b, 1, Ld), lambda b: (b, 0, 0)),
            pl.BlockSpec((block_b, 1, 1), lambda b: (b, 0, 0)),
        ],
        out_specs=pl.BlockSpec((block_b, 1, 2 * K), lambda b: (b, 0, 0)),
        compiler_params=pltpu.CompilerParams(
            dimension_semantics=("parallel",)),
    )(q_emb, q_ctx, q_mask_col, d_emb, d_ctx, d_mask_col, d_mask_row, inv_dl)

    out = out[:B, 0, :]
    return out[:, :K], out[:, K:]


# ----------------------------------------------------------------------------
# Plain-JAX glue: embeddings, positional features, transformer contextualizer
# (matches nn.TransformerEncoderLayer semantics: post-norm, relu, dropout=0)
# ----------------------------------------------------------------------------
def add_positional_features(x, min_timescale=1.0, max_timescale=1e4):
    _, L, D = x.shape
    timesteps = jnp.arange(L, dtype=jnp.float32)
    num_ts = D // 2
    ts_range = jnp.arange(num_ts, dtype=jnp.float32)
    log_inc = math.log(max_timescale / min_timescale) / float(num_ts - 1)
    inv_ts = min_timescale * jnp.exp(ts_range * -log_inc)
    scaled = timesteps[:, None] * inv_ts[None, :]
    sinusoids = jnp.concatenate([jnp.sin(scaled), jnp.cos(scaled)], axis=1)
    return x + sinusoids[None, :, :]


def layer_norm(x, w, b, eps=1e-5):
    mu = jnp.mean(x, axis=-1, keepdims=True)
    var = jnp.mean(jnp.square(x - mu), axis=-1, keepdims=True)
    return (x - mu) / jnp.sqrt(var + eps) * w + b


def encoder_layer(x, mask, p, n_heads):
    B, L, D = x.shape
    hd = D // n_heads
    qkv = x @ p["in_w"].T + p["in_b"]
    q, k, v = jnp.split(qkv, 3, axis=-1)

    def split_heads(t):
        return t.reshape(B, L, n_heads, hd).transpose(0, 2, 1, 3)

    q, k, v = split_heads(q), split_heads(k), split_heads(v)
    scores = (q @ k.transpose(0, 1, 3, 2)) / jnp.sqrt(jnp.float32(hd))
    key_bias = jnp.where(mask[:, None, None, :] > 0, 0.0, -jnp.inf)
    attn = jax.nn.softmax(scores + key_bias, axis=-1)
    out = (attn @ v).transpose(0, 2, 1, 3).reshape(B, L, D)
    out = out @ p["out_w"].T + p["out_b"]
    x = layer_norm(x + out, p["ln1_w"], p["ln1_b"])
    ff = jax.nn.relu(x @ p["lin1_w"].T + p["lin1_b"]) @ p["lin2_w"].T + p["lin2_b"]
    x = layer_norm(x + ff, p["ln2_w"], p["ln2_b"])
    return x


def contextualize(x, mask, layers, n_heads):
    for p in layers:
        x = encoder_layer(x, mask, p, n_heads)
    return x


def init_params(key, vocab, D, n_layers, n_heads, n_kernels):
    keys = jax.random.split(key, 3 + 6 * n_layers)
    ki = iter(keys)
    params = {"emb": jax.random.normal(next(ki), (vocab, D), jnp.float32) * 0.1}
    layers = []
    for _ in range(n_layers):
        layers.append({
            "in_w": jax.random.normal(next(ki), (3 * D, D), jnp.float32) * 0.05,
            "in_b": jnp.zeros((3 * D,), jnp.float32),
            "out_w": jax.random.normal(next(ki), (D, D), jnp.float32) * 0.05,
            "out_b": jnp.zeros((D,), jnp.float32),
            "lin1_w": jax.random.normal(next(ki), (4 * D, D), jnp.float32) * 0.05,
            "lin1_b": jnp.zeros((4 * D,), jnp.float32),
            "lin2_w": jax.random.normal(next(ki), (D, 4 * D), jnp.float32) * 0.05,
            "lin2_b": jnp.zeros((D,), jnp.float32),
            "ln1_w": jnp.ones((D,), jnp.float32),
            "ln1_b": jnp.zeros((D,), jnp.float32),
            "ln2_w": jnp.ones((D,), jnp.float32),
            "ln2_b": jnp.zeros((D,), jnp.float32),
        })
    params["layers"] = layers
    params["dense_w"] = jax.random.uniform(next(ki), (1, n_kernels),
                                           jnp.float32, -0.014, 0.014)
    params["dense_mean_w"] = jax.random.uniform(next(ki), (1, n_kernels),
                                                jnp.float32, -0.014, 0.014)
    params["dense_comb_w"] = jax.random.uniform(next(ki), (1, 2),
                                                jnp.float32, -0.014, 0.014)
    return params


def tk_forward(params, q_tokens, d_tokens, n_heads, mus, sigmas):
    q_mask = (q_tokens > 0).astype(jnp.float32)
    d_mask = (d_tokens > 0).astype(jnp.float32)

    q_emb = jnp.take(params["emb"], q_tokens, axis=0)
    d_emb = jnp.take(params["emb"], d_tokens, axis=0)

    q_ctx = contextualize(add_positional_features(q_emb), q_mask,
                          params["layers"], n_heads)
    d_ctx = contextualize(add_positional_features(d_emb), d_mask,
                          params["layers"], n_heads)

    # hot path: cosine matrix + Gaussian kernel pooling (Pallas)
    per_kernel, per_kernel_mean = tk_kernel_pooling(
        q_emb, q_ctx, q_mask, d_emb, d_ctx, d_mask, mus, sigmas)

    dense_out = per_kernel @ params["dense_w"].T             # (B, 1)
    dense_mean_out = per_kernel_mean @ params["dense_mean_w"].T
    comb_in = jnp.concatenate([dense_out, dense_mean_out], axis=1)
    out = jnp.squeeze(comb_in @ params["dense_comb_w"].T, axis=1)  # (B,)
    return out, per_kernel, per_kernel_mean, q_emb, q_ctx, d_emb, d_ctx, q_mask, d_mask


# pure-JAX reference of the Pallas portion (for a correctness check)
def kernel_pooling_ref(q_emb, q_ctx, q_mask, d_emb, d_ctx, d_mask, mus, sigmas):
    mu = jnp.array(mus, jnp.float32).reshape(1, 1, 1, -1)
    sigma = jnp.array(sigmas, jnp.float32).reshape(1, 1, 1, -1)
    q = (0.5 * (q_emb * q_mask[..., None]) + 0.5 * q_ctx) * q_mask[..., None]
    d = (0.5 * (d_emb * d_mask[..., None]) + 0.5 * d_ctx) * d_mask[..., None]
    qn = q / (jnp.linalg.norm(q, axis=-1, keepdims=True) + 1e-13)
    dn = d / (jnp.linalg.norm(d, axis=-1, keepdims=True) + 1e-13)
    cos = jnp.einsum("bqd,bkd->bqk", qn, dn)
    m = q_mask[:, :, None] * d_mask[:, None, :]
    kern = jnp.exp(-jnp.square((cos * m)[..., None] - mu) / (2 * jnp.square(sigma))) * m[..., None]
    pkq = jnp.sum(kern, axis=2)
    doc_len = jnp.sum(d_mask, axis=1)
    pk = jnp.sum(jnp.log2(jnp.clip(pkq, 1e-10)) * 0.01 * q_mask[..., None], axis=1)
    pkm = jnp.sum(pkq / (doc_len[:, None, None] + 1) * 0.01 * q_mask[..., None], axis=1)
    return pk, pkm


if __name__ == "__main__":
    B, Lq, Ld, D = 2, 8, 16, 32
    n_heads, n_layers, n_kernels, vocab = 4, 2, 8, 50

    mus = kernel_mus(n_kernels)
    sigmas = kernel_sigmas(n_kernels)

    key = jax.random.PRNGKey(0)
    k_param, k_q, k_d = jax.random.split(key, 3)
    params = init_params(k_param, vocab, D, n_layers, n_heads, n_kernels)

    q_tokens = jax.random.randint(k_q, (B, Lq), 1, vocab)
    d_tokens = jax.random.randint(k_d, (B, Ld), 1, vocab)
    # introduce padding (token id 0 == pad)
    q_tokens = q_tokens.at[0, 6:].set(0)
    d_tokens = d_tokens.at[1, 11:].set(0)

    out, pk, pkm, q_emb, q_ctx, d_emb, d_ctx, q_mask, d_mask = tk_forward(
        params, q_tokens, d_tokens, n_heads, mus, sigmas)
    jax.block_until_ready(out)

    pk_ref, pkm_ref = kernel_pooling_ref(
        q_emb, q_ctx, q_mask, d_emb, d_ctx, d_mask, mus, sigmas)
    np.testing.assert_allclose(np.asarray(pk), np.asarray(pk_ref),
                               rtol=1e-2, atol=1e-3)
    np.testing.assert_allclose(np.asarray(pkm), np.asarray(pkm_ref),
                               rtol=1e-2, atol=1e-3)
    assert out.shape == (B,) and bool(jnp.all(jnp.isfinite(out)))

    print("KERNEL_OK")
</pallas_src>

<mosaic_0001>
module attributes {stable_mosaic.version = 11 : i64} {
  func.func @tk_core_kernel(%arg0: i32, %arg1: memref<2x8x32xf32, #tpu.memory_space<vmem>>, %arg2: memref<2x8x32xf32, #tpu.memory_space<vmem>>, %arg3: memref<2x8x1xf32, #tpu.memory_space<vmem>>, %arg4: memref<2x16x32xf32, #tpu.memory_space<vmem>>, %arg5: memref<2x16x32xf32, #tpu.memory_space<vmem>>, %arg6: memref<2x16x1xf32, #tpu.memory_space<vmem>>, %arg7: memref<2x1x16xf32, #tpu.memory_space<vmem>>, %arg8: memref<2x1x1xf32, #tpu.memory_space<vmem>>, %arg9: memref<2x1x16xf32, #tpu.memory_space<vmem>>) attributes {dimension_semantics = [#tpu.dimension_semantics<parallel>], iteration_bounds = array<i64: 1>, scalar_prefetch = 0 : i64, scratch_operands = 0 : i64, tpu.core_type = #tpu.core_type<tc>, window_params = [{transform_indices = @transform_0, window_bounds = array<i64: 2, 8, 32>}, {transform_indices = @transform_1, window_bounds = array<i64: 2, 8, 32>}, {transform_indices = @transform_2, window_bounds = array<i64: 2, 8, 1>}, {transform_indices = @transform_3, window_bounds = array<i64: 2, 16, 32>}, {transform_indices = @transform_4, window_bounds = array<i64: 2, 16, 32>}, {transform_indices = @transform_5, window_bounds = array<i64: 2, 16, 1>}, {transform_indices = @transform_6, window_bounds = array<i64: 2, 1, 16>}, {transform_indices = @transform_7, window_bounds = array<i64: 2, 1, 1>}, {transform_indices = @transform_8, window_bounds = array<i64: 2, 1, 16>}]} {
    %c0 = arith.constant 0 : index
    %c0_0 = arith.constant 0 : index
    %c0_1 = arith.constant 0 : index
    %0 = vector.load %arg3[%c0, %c0_0, %c0_1] : memref<2x8x1xf32, #tpu.memory_space<vmem>>, vector<2x8x1xf32>
    %c0_2 = arith.constant 0 : index
    %c0_3 = arith.constant 0 : index
    %c0_4 = arith.constant 0 : index
    %1 = vector.load %arg6[%c0_2, %c0_3, %c0_4] : memref<2x16x1xf32, #tpu.memory_space<vmem>>, vector<2x16x1xf32>
    %c0_5 = arith.constant 0 : index
    %c0_6 = arith.constant 0 : index
    %c0_7 = arith.constant 0 : index
    %2 = vector.load %arg7[%c0_5, %c0_6, %c0_7] : memref<2x1x16xf32, #tpu.memory_space<vmem>>, vector<2x1x16xf32>
    %c0_8 = arith.constant 0 : index
    %c0_9 = arith.constant 0 : index
    %c0_10 = arith.constant 0 : index
    %3 = vector.load %arg8[%c0_8, %c0_9, %c0_10] : memref<2x1x1xf32, #tpu.memory_space<vmem>>, vector<2x1x1xf32>
    %4 = vector.broadcast %3 : vector<2x1x1xf32> to vector<2x8x1xf32>
    %5 = arith.mulf %4, %0 : vector<2x8x1xf32>
    %c0_11 = arith.constant 0 : index
    %c0_12 = arith.constant 0 : index
    %c0_13 = arith.constant 0 : index
    %6 = vector.load %arg1[%c0_11, %c0_12, %c0_13] : memref<2x8x32xf32, #tpu.memory_space<vmem>>, vector<2x8x32xf32>
    %7 = vector.broadcast %0 : vector<2x8x1xf32> to vector<2x8x32xf32>
    %8 = arith.mulf %6, %7 : vector<2x8x32xf32>
    %cst = arith.constant 5.000000e-01 : f32
    %9 = vector.broadcast %cst : f32 to vector<2x8x32xf32>
    %10 = arith.mulf %9, %8 : vector<2x8x32xf32>
    %c0_14 = arith.constant 0 : index
    %c0_15 = arith.constant 0 : index
    %c0_16 = arith.constant 0 : index
    %11 = vector.load %arg2[%c0_14, %c0_15, %c0_16] : memref<2x8x32xf32, #tpu.memory_space<vmem>>, vector<2x8x32xf32>
    %cst_17 = arith.constant 5.000000e-01 : f32
    %12 = vector.broadcast %cst_17 : f32 to vector<2x8x32xf32>
    %13 = arith.mulf %12, %11 : vector<2x8x32xf32>
    %14 = arith.addf %10, %13 : vector<2x8x32xf32>
    %15 = vector.broadcast %0 : vector<2x8x1xf32> to vector<2x8x32xf32>
    %16 = arith.mulf %14, %15 : vector<2x8x32xf32>
    %c0_18 = arith.constant 0 : index
    %c0_19 = arith.constant 0 : index
    %c0_20 = arith.constant 0 : index
    %17 = vector.load %arg4[%c0_18, %c0_19, %c0_20] : memref<2x16x32xf32, #tpu.memory_space<vmem>>, vector<2x16x32xf32>
    %18 = vector.broadcast %1 : vector<2x16x1xf32> to vector<2x16x32xf32>
    %19 = arith.mulf %17, %18 : vector<2x16x32xf32>
    %cst_21 = arith.constant 5.000000e-01 : f32
    %20 = vector.broadcast %cst_21 : f32 to vector<2x16x32xf32>
    %21 = arith.mulf %20, %19 : vector<2x16x32xf32>
    %c0_22 = arith.constant 0 : index
    %c0_23 = arith.constant 0 : index
    %c0_24 = arith.constant 0 : index
    %22 = vector.load %arg5[%c0_22, %c0_23, %c0_24] : memref<2x16x32xf32, #tpu.memory_space<vmem>>, vector<2x16x32xf32>
    %cst_25 = arith.constant 5.000000e-01 : f32
    %23 = vector.broadcast %cst_25 : f32 to vector<2x16x32xf32>
    %24 = arith.mulf %23, %22 : vector<2x16x32xf32>
    %25 = arith.addf %21, %24 : vector<2x16x32xf32>
    %26 = vector.broadcast %1 : vector<2x16x1xf32> to vector<2x16x32xf32>
    %27 = arith.mulf %25, %26 : vector<2x16x32xf32>
    %28 = arith.mulf %16, %16 : vector<2x8x32xf32>
    %cst_26 = arith.constant dense<0.000000e+00> : vector<2x8xf32>
    %29 = vector.multi_reduction <add>, %28, %cst_26 [2] : vector<2x8x32xf32> to vector<2x8xf32>
    %30 = vector.shape_cast %29 : vector<2x8xf32> to vector<2x8x1xf32>
    %cst_27 = arith.constant 9.99999988E-27 : f32
    %31 = vector.broadcast %cst_27 : f32 to vector<2x8x1xf32>
    %32 = arith.addf %30, %31 : vector<2x8x1xf32>
    %33 = math.rsqrt %32 : vector<2x8x1xf32>
    %34 = vector.broadcast %33 : vector<2x8x1xf32> to vector<2x8x32xf32>
    %35 = arith.mulf %16, %34 : vector<2x8x32xf32>
    %36 = arith.mulf %27, %27 : vector<2x16x32xf32>
    %cst_28 = arith.constant dense<0.000000e+00> : vector<2x16xf32>
    %37 = vector.multi_reduction <add>, %36, %cst_28 [2] : vector<2x16x32xf32> to vector<2x16xf32>
    %38 = vector.shape_cast %37 : vector<2x16xf32> to vector<2x16x1xf32>
    %cst_29 = arith.constant 9.99999988E-27 : f32
    %39 = vector.broadcast %cst_29 : f32 to vector<2x16x1xf32>
    %40 = arith.addf %38, %39 : vector<2x16x1xf32>
    %41 = math.rsqrt %40 : vector<2x16x1xf32>
    %42 = vector.broadcast %41 : vector<2x16x1xf32> to vector<2x16x32xf32>
    %43 = arith.mulf %27, %42 : vector<2x16x32xf32>
    "tpu.trace_start"() <{level = 10 : i32, message = "bqd,bkd->bqk"}> : () -> ()
    %cst_30 = arith.constant dense<0.000000e+00> : vector<2x8x16xf32>
    %44 = tpu.matmul %35, %43, %cst_30 {dimension_numbers = #tpu.dot_dimension_numbers<[2], [2], [1], [1], [0, 0, 0, 1, 1, 1], [0], [0]>} : vector<2x8x32xf32>, vector<2x16x32xf32>, vector<2x8x16xf32> -> vector<2x8x16xf32>
    "tpu.trace_stop"() : () -> ()
    %cst_31 = arith.constant 1.000000e+00 : f32
    %45 = vector.broadcast %cst_31 : f32 to vector<2x8x16xf32>
    %46 = arith.subf %44, %45 : vector<2x8x16xf32>
    %47 = arith.mulf %46, %46 : vector<2x8x16xf32>
    %cst_32 = arith.constant -5.000000e+07 : f32
    %48 = vector.broadcast %cst_32 : f32 to vector<2x8x16xf32>
    %49 = arith.mulf %48, %47 : vector<2x8x16xf32>
    %50 = math.exp %49 : vector<2x8x16xf32>
    %51 = vector.broadcast %2 : vector<2x1x16xf32> to vector<2x8x16xf32>
    %52 = arith.mulf %50, %51 : vector<2x8x16xf32>
    %cst_33 = arith.constant dense<0.000000e+00> : vector<2x8xf32>
    %53 = vector.multi_reduction <add>, %52, %cst_33 [2] : vector<2x8x16xf32> to vector<2x8xf32>
    %54 = vector.shape_cast %53 : vector<2x8xf32> to vector<2x8x1xf32>
    %cst_34 = arith.constant 1.000000e-10 : f32
    %55 = vector.broadcast %cst_34 : f32 to vector<2x8x1xf32>
    %56 = arith.maximumf %54, %55 : vector<2x8x1xf32>
    %57 = math.log %56 : vector<2x8x1xf32>
    %cst_35 = arith.constant 2.000000e+00 : f32
    %58 = math.log %cst_35 : f32
    %59 = vector.broadcast %58 : f32 to vector<2x8x1xf32>
    %60 = arith.divf %57, %59 : vector<2x8x1xf32>
    %cst_36 = arith.constant 0.00999999977 : f32
    %61 = vector.broadcast %cst_36 : f32 to vector<2x8x1xf32>
    %62 = arith.mulf %60, %61 : vector<2x8x1xf32>
    %63 = arith.mulf %62, %0 : vector<2x8x1xf32>
    %cst_37 = arith.constant dense<0.000000e+00> : vector<2x1xf32>
    %64 = vector.multi_reduction <add>, %63, %cst_37 [1] : vector<2x8x1xf32> to vector<2x1xf32>
    %65 = vector.shape_cast %64 : vector<2x1xf32> to vector<2x1x1xf32>
    %66 = arith.mulf %54, %5 : vector<2x8x1xf32>
    %cst_38 = arith.constant dense<0.000000e+00> : vector<2x1xf32>
    %67 = vector.multi_reduction <add>, %66, %cst_38 [1] : vector<2x8x1xf32> to vector<2x1xf32>
    %68 = vector.shape_cast %67 : vector<2x1xf32> to vector<2x1x1xf32>
    %cst_39 = arith.constant 1.11022302E-16 : f32
    %69 = vector.broadcast %cst_39 : f32 to vector<2x8x16xf32>
    %70 = arith.subf %44, %69 : vector<2x8x16xf32>
    %71 = arith.mulf %70, %70 : vector<2x8x16xf32>
    %cst_40 = arith.constant -2.450000e+01 : f32
    %72 = vector.broadcast %cst_40 : f32 to vector<2x8x16xf32>
    %73 = arith.mulf %72, %71 : vector<2x8x16xf32>
    %74 = math.exp %73 : vector<2x8x16xf32>
    %75 = vector.broadcast %2 : vector<2x1x16xf32> to vector<2x8x16xf32>
    %76 = arith.mulf %74, %75 : vector<2x8x16xf32>
    %cst_41 = arith.constant -1.400000e+01 : f32
    %77 = vector.broadcast %cst_41 : f32 to vector<2x8x16xf32>
    %78 = arith.mulf %77, %70 : vector<2x8x16xf32>
    %cst_42 = arith.constant 2.000000e+00 : f32
    %79 = vector.broadcast %cst_42 : f32 to vector<2x8x16xf32>
    %80 = arith.subf %78, %79 : vector<2x8x16xf32>
    %81 = math.exp %80 : vector<2x8x16xf32>
    %cst_43 = arith.constant 1.400000e+01 : f32
    %82 = vector.broadcast %cst_43 : f32 to vector<2x8x16xf32>
    %83 = arith.mulf %82, %70 : vector<2x8x16xf32>
    %cst_44 = arith.constant 2.000000e+00 : f32
    %84 = vector.broadcast %cst_44 : f32 to vector<2x8x16xf32>
    %85 = arith.subf %83, %84 : vector<2x8x16xf32>
    %86 = math.exp %85 : vector<2x8x16xf32>
    %cst_45 = arith.constant dense<0.000000e+00> : vector<2x8xf32>
    %87 = vector.multi_reduction <add>, %76, %cst_45 [2] : vector<2x8x16xf32> to vector<2x8xf32>
    %88 = vector.shape_cast %87 : vector<2x8xf32> to vector<2x8x1xf32>
    %cst_46 = arith.constant 1.000000e-10 : f32
    %89 = vector.broadcast %cst_46 : f32 to vector<2x8x1xf32>
    %90 = arith.maximumf %88, %89 : vector<2x8x1xf32>
    %91 = math.log %90 : vector<2x8x1xf32>
    %cst_47 = arith.constant 2.000000e+00 : f32
    %92 = math.log %cst_47 : f32
    %93 = vector.broadcast %92 : f32 to vector<2x8x1xf32>
    %94 = arith.divf %91, %93 : vector<2x8x1xf32>
    %cst_48 = arith.constant 0.00999999977 : f32
    %95 = vector.broadcast %cst_48 : f32 to vector<2x8x1xf32>
    %96 = arith.mulf %94, %95 : vector<2x8x1xf32>
    %97 = arith.mulf %96, %0 : vector<2x8x1xf32>
    %cst_49 = arith.constant dense<0.000000e+00> : vector<2x1xf32>
    %98 = vector.multi_reduction <add>, %97, %cst_49 [1] : vector<2x8x1xf32> to vector<2x1xf32>
    %99 = vector.shape_cast %98 : vector<2x1xf32> to vector<2x1x1xf32>
    %100 = arith.mulf %88, %5 : vector<2x8x1xf32>
    %cst_50 = arith.constant dense<0.000000e+00> : vector<2x1xf32>
    %101 = vector.multi_reduction <add>, %100, %cst_50 [1] : vector<2x8x1xf32> to vector<2x1xf32>
    %102 = vector.shape_cast %101 : vector<2x1xf32> to vector<2x1x1xf32>
    %103 = arith.mulf %76, %81 : vector<2x8x16xf32>
    %cst_51 = arith.constant dense<0.000000e+00> : vector<2x8xf32>
    %104 = vector.multi_reduction <add>, %103, %cst_51 [2] : vector<2x8x16xf32> to vector<2x8xf32>
    %105 = vector.shape_cast %104 : vector<2x8xf32> to vector<2x8x1xf32>
    %cst_52 = arith.constant 1.000000e-10 : f32
    %106 = vector.broadcast %cst_52 : f32 to vector<2x8x1xf32>
    %107 = arith.maximumf %105, %106 : vector<2x8x1xf32>
    %108 = math.log %107 : vector<2x8x1xf32>
    %cst_53 = arith.constant 2.000000e+00 : f32
    %109 = math.log %cst_53 : f32
    %110 = vector.broadcast %109 : f32 to vector<2x8x1xf32>
    %111 = arith.divf %108, %110 : vector<2x8x1xf32>
    %cst_54 = arith.constant 0.00999999977 : f32
    %112 = vector.broadcast %cst_54 : f32 to vector<2x8x1xf32>
    %113 = arith.mulf %111, %112 : vector<2x8x1xf32>
    %114 = arith.mulf %113, %0 : vector<2x8x1xf32>
    %cst_55 = arith.constant dense<0.000000e+00> : vector<2x1xf32>
    %115 = vector.multi_reduction <add>, %114, %cst_55 [1] : vector<2x8x1xf32> to vector<2x1xf32>
    %116 = vector.shape_cast %115 : vector<2x1xf32> to vector<2x1x1xf32>
    %117 = arith.mulf %105, %5 : vector<2x8x1xf32>
    %cst_56 = arith.constant dense<0.000000e+00> : vector<2x1xf32>
    %118 = vector.multi_reduction <add>, %117, %cst_56 [1] : vector<2x8x1xf32> to vector<2x1xf32>
    %119 = vector.shape_cast %118 : vector<2x1xf32> to vector<2x1x1xf32>
    %120 = arith.mulf %103, %81 : vector<2x8x16xf32>
    %cst_57 = arith.constant 0.0183156393 : f32
    %121 = vector.broadcast %cst_57 : f32 to vector<2x8x16xf32>
    %122 = arith.mulf %120, %121 : vector<2x8x16xf32>
    %cst_58 = arith.constant dense<0.000000e+00> : vector<2x8xf32>
    %123 = vector.multi_reduction <add>, %122, %cst_58 [2] : vector<2x8x16xf32> to vector<2x8xf32>
    %124 = vector.shape_cast %123 : vector<2x8xf32> to vector<2x8x1xf32>
    %cst_59 = arith.constant 1.000000e-10 : f32
    %125 = vector.broadcast %cst_59 : f32 to vector<2x8x1xf32>
    %126 = arith.maximumf %124, %125 : vector<2x8x1xf32>
    %127 = math.log %126 : vector<2x8x1xf32>
    %cst_60 = arith.constant 2.000000e+00 : f32
    %128 = math.log %cst_60 : f32
    %129 = vector.broadcast %128 : f32 to vector<2x8x1xf32>
    %130 = arith.divf %127, %129 : vector<2x8x1xf32>
    %cst_61 = arith.constant 0.00999999977 : f32
    %131 = vector.broadcast %cst_61 : f32 to vector<2x8x1xf32>
    %132 = arith.mulf %130, %131 : vector<2x8x1xf32>
    %133 = arith.mulf %132, %0 : vector<2x8x1xf32>
    %cst_62 = arith.constant dense<0.000000e+00> : vector<2x1xf32>
    %134 = vector.multi_reduction <add>, %133, %cst_62 [1] : vector<2x8x1xf32> to vector<2x1xf32>
    %135 = vector.shape_cast %134 : vector<2x1xf32> to vector<2x1x1xf32>
    %136 = arith.mulf %124, %5 : vector<2x8x1xf32>
    %cst_63 = arith.constant dense<0.000000e+00> : vector<2x1xf32>
    %137 = vector.multi_reduction <add>, %136, %cst_63 [1] : vector<2x8x1xf32> to vector<2x1xf32>
    %138 = vector.shape_cast %137 : vector<2x1xf32> to vector<2x1x1xf32>
    %139 = arith.mulf %122, %81 : vector<2x8x16xf32>
    %cst_64 = arith.constant 3.35462624E-4 : f32
    %140 = vector.broadcast %cst_64 : f32 to vector<2x8x16xf32>
    %141 = arith.mulf %139, %140 : vector<2x8x16xf32>
    %cst_65 = arith.constant dense<0.000000e+00> : vector<2x8xf32>
    %142 = vector.multi_reduction <add>, %141, %cst_65 [2] : vector<2x8x16xf32> to vector<2x8xf32>
    %143 = vector.shape_cast %142 : vector<2x8xf32> to vector<2x8x1xf32>
    %cst_66 = arith.constant 1.000000e-10 : f32
    %144 = vector.broadcast %cst_66 : f32 to vector<2x8x1xf32>
    %145 = arith.maximumf %143, %144 : vector<2x8x1xf32>
    %146 = math.log %145 : vector<2x8x1xf32>
    %cst_67 = arith.constant 2.000000e+00 : f32
    %147 = math.log %cst_67 : f32
    %148 = vector.broadcast %147 : f32 to vector<2x8x1xf32>
    %149 = arith.divf %146, %148 : vector<2x8x1xf32>
    %cst_68 = arith.constant 0.00999999977 : f32
    %150 = vector.broadcast %cst_68 : f32 to vector<2x8x1xf32>
    %151 = arith.mulf %149, %150 : vector<2x8x1xf32>
    %152 = arith.mulf %151, %0 : vector<2x8x1xf32>
    %cst_69 = arith.constant dense<0.000000e+00> : vector<2x1xf32>
    %153 = vector.multi_reduction <add>, %152, %cst_69 [1] : vector<2x8x1xf32> to vector<2x1xf32>
    %154 = vector.shape_cast %153 : vector<2x1xf32> to vector<2x1x1xf32>
    %155 = arith.mulf %143, %5 : vector<2x8x1xf32>
    %cst_70 = arith.constant dense<0.000000e+00> : vector<2x1xf32>
    %156 = vector.multi_reduction <add>, %155, %cst_70 [1] : vector<2x8x1xf32> to vector<2x1xf32>
    %157 = vector.shape_cast %156 : vector<2x1xf32> to vector<2x1x1xf32>
    %158 = arith.mulf %76, %86 : vector<2x8x16xf32>
    %cst_71 = arith.constant dense<0.000000e+00> : vector<2x8xf32>
    %159 = vector.multi_reduction <add>, %158, %cst_71 [2] : vector<2x8x16xf32> to vector<2x8xf32>
    %160 = vector.shape_cast %159 : vector<2x8xf32> to vector<2x8x1xf32>
    %cst_72 = arith.constant 1.000000e-10 : f32
    %161 = vector.broadcast %cst_72 : f32 to vector<2x8x1xf32>
    %162 = arith.maximumf %160, %161 : vector<2x8x1xf32>
    %163 = math.log %162 : vector<2x8x1xf32>
    %cst_73 = arith.constant 2.000000e+00 : f32
    %164 = math.log %cst_73 : f32
    %165 = vector.broadcast %164 : f32 to vector<2x8x1xf32>
    %166 = arith.divf %163, %165 : vector<2x8x1xf32>
    %cst_74 = arith.constant 0.00999999977 : f32
    %167 = vector.broadcast %cst_74 : f32 to vector<2x8x1xf32>
    %168 = arith.mulf %166, %167 : vector<2x8x1xf32>
    %169 = arith.mulf %168, %0 : vector<2x8x1xf32>
    %cst_75 = arith.constant dense<0.000000e+00> : vector<2x1xf32>
    %170 = vector.multi_reduction <add>, %169, %cst_75 [1] : vector<2x8x1xf32> to vector<2x1xf32>
    %171 = vector.shape_cast %170 : vector<2x1xf32> to vector<2x1x1xf32>
    %172 = arith.mulf %160, %5 : vector<2x8x1xf32>
    %cst_76 = arith.constant dense<0.000000e+00> : vector<2x1xf32>
    %173 = vector.multi_reduction <add>, %172, %cst_76 [1] : vector<2x8x1xf32> to vector<2x1xf32>
    %174 = vector.shape_cast %173 : vector<2x1xf32> to vector<2x1x1xf32>
    %175 = arith.mulf %158, %86 : vector<2x8x16xf32>
    %cst_77 = arith.constant 0.0183156393 : f32
    %176 = vector.broadcast %cst_77 : f32 to vector<2x8x16xf32>
    %177 = arith.mulf %175, %176 : vector<2x8x16xf32>
    %cst_78 = arith.constant dense<0.000000e+00> : vector<2x8xf32>
    %178 = vector.multi_reduction <add>, %177, %cst_78 [2] : vector<2x8x16xf32> to vector<2x8xf32>
    %179 = vector.shape_cast %178 : vector<2x8xf32> to vector<2x8x1xf32>
    %cst_79 = arith.constant 1.000000e-10 : f32
    %180 = vector.broadcast %cst_79 : f32 to vector<2x8x1xf32>
    %181 = arith.maximumf %179, %180 : vector<2x8x1xf32>
    %182 = math.log %181 : vector<2x8x1xf32>
    %cst_80 = arith.constant 2.000000e+00 : f32
    %183 = math.log %cst_80 : f32
    %184 = vector.broadcast %183 : f32 to vector<2x8x1xf32>
    %185 = arith.divf %182, %184 : vector<2x8x1xf32>
    %cst_81 = arith.constant 0.00999999977 : f32
    %186 = vector.broadcast %cst_81 : f32 to vector<2x8x1xf32>
    %187 = arith.mulf %185, %186 : vector<2x8x1xf32>
    %188 = arith.mulf %187, %0 : vector<2x8x1xf32>
    %cst_82 = arith.constant dense<0.000000e+00> : vector<2x1xf32>
    %189 = vector.multi_reduction <add>, %188, %cst_82 [1] : vector<2x8x1xf32> to vector<2x1xf32>
    %190 = vector.shape_cast %189 : vector<2x1xf32> to vector<2x1x1xf32>
    %191 = arith.mulf %179, %5 : vector<2x8x1xf32>
    %cst_83 = arith.constant dense<0.000000e+00> : vector<2x1xf32>
    %192 = vector.multi_reduction <add>, %191, %cst_83 [1] : vector<2x8x1xf32> to vector<2x1xf32>
    %193 = vector.shape_cast %192 : vector<2x1xf32> to vector<2x1x1xf32>
    %194 = arith.mulf %177, %86 : vector<2x8x16xf32>
    %cst_84 = arith.constant 3.35462624E-4 : f32
    %195 = vector.broadcast %cst_84 : f32 to vector<2x8x16xf32>
    %196 = arith.mulf %194, %195 : vector<2x8x16xf32>
    %cst_85 = arith.constant dense<0.000000e+00> : vector<2x8xf32>
    %197 = vector.multi_reduction <add>, %196, %cst_85 [2] : vector<2x8x16xf32> to vector<2x8xf32>
    %198 = vector.shape_cast %197 : vector<2x8xf32> to vector<2x8x1xf32>
    %cst_86 = arith.constant 1.000000e-10 : f32
    %199 = vector.broadcast %cst_86 : f32 to vector<2x8x1xf32>
    %200 = arith.maximumf %198, %199 : vector<2x8x1xf32>
    %201 = math.log %200 : vector<2x8x1xf32>
    %cst_87 = arith.constant 2.000000e+00 : f32
    %202 = math.log %cst_87 : f32
    %203 = vector.broadcast %202 : f32 to vector<2x8x1xf32>
    %204 = arith.divf %201, %203 : vector<2x8x1xf32>
    %cst_88 = arith.constant 0.00999999977 : f32
    %205 = vector.broadcast %cst_88 : f32 to vector<2x8x1xf32>
    %206 = arith.mulf %204, %205 : vector<2x8x1xf32>
    %207 = arith.mulf %206, %0 : vector<2x8x1xf32>
    %cst_89 = arith.constant dense<0.000000e+00> : vector<2x1xf32>
    %208 = vector.multi_reduction <add>, %207, %cst_89 [1] : vector<2x8x1xf32> to vector<2x1xf32>
    %209 = vector.shape_cast %208 : vector<2x1xf32> to vector<2x1x1xf32>
    %210 = arith.mulf %198, %5 : vector<2x8x1xf32>
    %cst_90 = arith.constant dense<0.000000e+00> : vector<2x1xf32>
    %211 = vector.multi_reduction <add>, %210, %cst_90 [1] : vector<2x8x1xf32> to vector<2x1xf32>
    %212 = vector.shape_cast %211 : vector<2x1xf32> to vector<2x1x1xf32>
    %213 = tpu.concatenate %65, %209, %190, %171, %99, %116, %135, %154, %68, %212, %193, %174, %102, %119, %138, %157 in 2 : vector<2x1x1xf32>, vector<2x1x1xf32>, vector<2x1x1xf32>, vector<2x1x1xf32>, vector<2x1x1xf32>, vector<2x1x1xf32>, vector<2x1x1xf32>, vector<2x1x1xf32>, vector<2x1x1xf32>, vector<2x1x1xf32>, vector<2x1x1xf32>, vector<2x1x1xf32>, vector<2x1x1xf32>, vector<2x1x1xf32>, vector<2x1x1xf32>, vector<2x1x1xf32> -> vector<2x1x16xf32>
    %c0_91 = arith.constant 0 : index
    %c0_92 = arith.constant 0 : index
    %c0_93 = arith.constant 0 : index
    %214 = vector.load %arg9[%c0_91, %c0_92, %c0_93] : memref<2x1x16xf32, #tpu.memory_space<vmem>>, vector<2x1x16xf32>
    tpu.vector_store %arg9[%c0_91, %c0_92, %c0_93], %213 {strides = array<i32>} : memref<2x1x16xf32, #tpu.memory_space<vmem>>, vector<2x1x16xf32>,
    return
  }
  func.func @transform_0(%arg0: i32) -> (i32, i32, i32) {
    %c0_i32 = arith.constant 0 : i32
    %c0_i32_0 = arith.constant 0 : i32
    %c0_i32_1 = arith.constant 0 : i32
    return %arg0, %c0_i32, %c0_i32_0 : i32, i32, i32
  }
  func.func @transform_1(%arg0: i32) -> (i32, i32, i32) {
    %c0_i32 = arith.constant 0 : i32
    %c0_i32_0 = arith.constant 0 : i32
    %c0_i32_1 = arith.constant 0 : i32
    return %arg0, %c0_i32, %c0_i32_0 : i32, i32, i32
  }
  func.func @transform_2(%arg0: i32) -> (i32, i32, i32) {
    %c0_i32 = arith.constant 0 : i32
    %c0_i32_0 = arith.constant 0 : i32
    %c0_i32_1 = arith.constant 0 : i32
    return %arg0, %c0_i32, %c0_i32_0 : i32, i32, i32
  }
  func.func @transform_3(%arg0: i32) -> (i32, i32, i32) {
    %c0_i32 = arith.constant 0 : i32
    %c0_i32_0 = arith.constant 0 : i32
    %c0_i32_1 = arith.constant 0 : i32
    return %arg0, %c0_i32, %c0_i32_0 : i32, i32, i32
  }
  func.func @transform_4(%arg0: i32) -> (i32, i32, i32) {
    %c0_i32 = arith.constant 0 : i32
    %c0_i32_0 = arith.constant 0 : i32
    %c0_i32_1 = arith.constant 0 : i32
    return %arg0, %c0_i32, %c0_i32_0 : i32, i32, i32
  }
  func.func @transform_5(%arg0: i32) -> (i32, i32, i32) {
    %c0_i32 = arith.constant 0 : i32
    %c0_i32_0 = arith.constant 0 : i32
    %c0_i32_1 = arith.constant 0 : i32
    return %arg0, %c0_i32, %c0_i32_0 : i32, i32, i32
  }
  func.func @transform_6(%arg0: i32) -> (i32, i32, i32) {
    %c0_i32 = arith.constant 0 : i32
    %c0_i32_0 = arith.constant 0 : i32
    %c0_i32_1 = arith.constant 0 : i32
    return %arg0, %c0_i32, %c0_i32_0 : i32, i32, i32
  }
  func.func @transform_7(%arg0: i32) -> (i32, i32, i32) {
    %c0_i32 = arith.constant 0 : i32
    %c0_i32_0 = arith.constant 0 : i32
    %c0_i32_1 = arith.constant 0 : i32
    return %arg0, %c0_i32, %c0_i32_0 : i32, i32, i32
  }
  func.func @transform_8(%arg0: i32) -> (i32, i32, i32) {
    %c0_i32 = arith.constant 0 : i32
    %c0_i32_0 = arith.constant 0 : i32
    %c0_i32_1 = arith.constant 0 : i32
    return %arg0, %c0_i32, %c0_i32_0 : i32, i32, i32
  }
}

</mosaic_0001>

<bundles_post_ra>
// kernel: tpu_custom_call.1
= control target key start
LH: loop header
LB: loop body
LE: loop exit
PB: predicated region body
PF: predicated region fallthrough
CT: control target
= control target key end

     0   :  { %13 = vsyncpa [#allocation3], 0  ;;  %s1539_s0 = inlined_call_operand.vmem [shape: f32[2,8,32], index: 0, kind: input, shape index: {}]   ;;  %s1540_s1 = inlined_call_operand.hbm [shape: f32[2,8,32], index: 1, kind: input, shape index: {}]   ;;  %s1541_s2 = inlined_call_operand.vmem [shape: f32[2,8,1], index: 2, kind: input, shape index: {}]   ;;  %s1542_s3 = inlined_call_operand.vmem [shape: f32[2,16,32], index: 3, kind: input, shape index: {}]   ;;  %s1543_s4 = inlined_call_operand.hbm [shape: f32[2,16,32], index: 4, kind: input, shape index: {}]   ;;  %s1544_s5 = inlined_call_operand.vmem [shape: f32[2,16,1], index: 5, kind: input, shape index: {}]   ;;  %s1545_s6 = inlined_call_operand.vmem [shape: f32[2,1,16], index: 6, kind: input, shape index: {}]   ;;  %s1546_s7 = inlined_call_operand.vmem [shape: f32[2,1,1], index: 7, kind: input, shape index: {}]   ;;  %s1547_s8 = inlined_call_operand.hbm [shape: f32[2,1,16], index: 8, kind: output, shape index: {}]  }
   0x1   :  { %14 = vsyncpa [#allocation6], 0 }
   0x2   :  { %15 = vsyncpa [#allocation4], 0  ;;  %s22_s29 = sshll.u32 %s1540_s1, 4  ;;  %s1138_s30 = smov [#allocation2]   ;;  %s23_s29 = int_to_ptr.hbm [resolvable:$true] %s22_s29 }
   0x3   :  { %s24_s9 = sshll.u32 %s1138_s30, 4  ;;  %s39_s12 = sshll.u32 %s1543_s4, 4  ;;  %s25_s9 = int_to_ptr.vmem [resolvable:$true] %s24_s9  ;;  %s40_s12 = int_to_ptr.hbm [resolvable:$true] %s39_s12 }
   0x4   :  { %s1139_s13 = smov 128   ;;  %s1140_s14 = smov 8  }
   0x5   :  { %30 = dma.hbm_to_vmem [thread:$0]  %s23_s29, 256, %s25_s9, [#allocation3], %s1139_s13, %s1139_s13, %s1140_s14  }
   0x6   :  { %s1141_s15 = smov [#allocation5]  }
   0x7   :  { %s41_s16 = sshll.u32 %s1141_s15, 4  ;;  %s42_s16 = int_to_ptr.vmem [resolvable:$true] %s41_s16 }
   0x8   :  { %47 = dma.hbm_to_vmem [thread:$0]  %s40_s12, 512, %s42_s16, [#allocation6], %s1139_s13, %s1139_s13, %s1140_s14  }
   0x9   :  { %1132 = dma.done.wait [#allocation3], 256  }
   0xa   :  { %1133 = vsyncadd [#allocation3], 4294967040 }
   0xb   :  { %1134 = dma.done.wait [#allocation6], 512  }
   0xc   :  { %1135 = vsyncadd [#allocation6], 4294966784  ;;  %v1142_v0 = vmov 0   ;;  %v65_v1 = vld [vmem:[%s1544_s5 + $0x8] sm:$0xff]  ;;  %v64_v2 = vld [vmem:[%s1544_s5] sm:$0xff]  ;;  %vm154_vm0 = vcmask 261120  }
   0xd   :  { %990 = vset.pattern.permute.xlu1 %v1142_v0  ;;  %989 = vset.pattern.permute.xlu0 %v1142_v0  ;;  %v1222_v3 = vld [vmem:[%s1541_s2] sm:$0xff]  ;;  %v67_v4 = vld [vmem:[%s1544_s5 + $0x18] sm:$0xff]  ;;  %v66_v5 = vld [vmem:[%s1544_s5 + $0x10] sm:$0xff]  ;;  %s1146_s20 = smov 11   ;;  %s1147_s21 = smov 10  }
   0xe   :  { %991 = vset.pattern.permute.xlu2 %v1142_v0  ;;  %115 = vperm.xlu0 %989, %v65_v1   ;;  %v1234_v6 = vld [vmem:[%s1541_s2 + $0x8] sm:$0xff]  ;;  %v80_v8 = vld [vmem:[%s1539_s0] sm:$0xff]  ;;  %v137_v10 = vld [vmem:[#allocation5 + $0x8] sm:$0xff]  ;;  %s1148_s22 = smov 9   ;;  %s1149_s27 = smov 4  }
   0xf   :  { %110 = vperm.xlu1 %990, %v64_v2   ;;  %84 = vperm.xlu2 %991, %v1222_v3   ;;  %v105_v9 = vld [vmem:[%s1542_s3 + $0x8] sm:$0xff]  ;;  %v104_v11 = vld [vmem:[%s1542_s3] sm:$0xff]  ;;  %v136_v12 = vld [vmem:[#allocation5] sm:$0xff]  ;;  %v141_v17 = vmul.f32 0.5, %v137_v10  ;;  %s1151_s28 = smov 5   ;;  %s1152_s29 = smov 6  }
  0x10   :  { %v96_v16 = vld [vmem:[#allocation2] sm:$0xff]  ;;  %v140_v19 = vmul.f32 0.5, %v136_v12  ;;  %v81_v23 = vld [vmem:[%s1539_s0 + $0x8] sm:$0xff]  ;;  %v107_v32 = vld [vmem:[%s1542_s3 + $0x18] sm:$0xff]  ;;  %s1153_s30 = smov 2   ;;  %s1154_s5 = smov 1  }
  0x11   :  { %v98_v25 = vmul.f32 0.5, %v96_v16  ;;  %v139_v29 = vld [vmem:[#allocation5 + $0x18] sm:$0xff]  ;;  %v138_v30 = vld [vmem:[#allocation5 + $0x10] sm:$0xff]  ;;  %v106_v33 = vld [vmem:[%s1542_s3 + $0x10] sm:$0xff]  ;;  %s1155_s9 = smov 7   ;;  %s1156_s10 = smov 14  }
  0x12   :  { %v97_v36 = vld [vmem:[#allocation2 + $0x8] sm:$0xff]  ;;  %v143_v38 = vmul.f32 0.5, %v139_v29  ;;  %v142_v40 = vmul.f32 0.5, %v138_v30  ;;  %s1157_s11 = smov 15   ;;  %s939_s15 = sshll.u32 %s1547_s8, 4  ;;  %s940_s15 = int_to_ptr.hbm [resolvable:$true] %s939_s15 }
  0x13   :  { %v99_v46 = vmul.f32 0.5, %v97_v36  ;;  %s1158_s16 = smov [#allocation7]   ;;  %s1159_s8 = smov 16  }
  0x14   :  { %s937_s0 = sshll.u32 %s1158_s16, 4  ;;  %s938_s0 = int_to_ptr.vmem [resolvable:$true] %s937_s0 }
  0x16   :  { %125 = vperm.xlu0 %989, %v67_v4  }
  0x17   :  { %120 = vperm.xlu1 %990, %v66_v5   ;;  %89 = vperm.xlu2 %991, %v1234_v6  }
  0x69   :  { %v85_v7 = vpop.permute.xlu2 %84 }
  0x6a   :  { %v92_v13 = vmul.f32 %v85_v7, %v80_v8 }
  0x6c   :  { %v94_v26 = vmul.f32 0.5, %v92_v13 }
  0x6e   :  { %v100_v37 = vadd.f32 %v98_v25, %v94_v26 }
  0x70   :  { %v1265_v52 = vmul.f32 %v100_v37, %v85_v7 }
  0x71   :  { %v90_v24 = vpop.permute.xlu2 %89 }
  0x72   :  { %v93_v31 = vmul.f32 %v90_v24, %v81_v23  ;;  %v152_v58 = vmul.f32 %v1265_v52, %v1265_v52 }
  0x74   :  { %v95_v47 = vmul.f32 0.5, %v93_v31  ;;  %v155_v0 = vsel %vm154_vm0, %v152_v58, 0.0 }
  0x76   :  { %v101_v55 = vadd.f32 %v99_v46, %v95_v47 }
  0x78   :  { %v1277_v61 = vmul.f32 %v101_v55, %v90_v24 }
  0x7a   :  { %v153_v1 = vmul.f32 %v1277_v61, %v1277_v61 }
  0x7c   :  { %v158_v2 = vsel %vm154_vm0, %v153_v1, 0.0 }
  0x80   :  { %v116_v14 = vpop.permute.xlu0 %115 }
  0x81   :  { %v111_v15 = vpop.permute.xlu1 %110  ;;  %v129_v18 = vmul.f32 %v116_v14, %v105_v9 }
  0x82   :  { %v128_v20 = vmul.f32 %v111_v15, %v104_v11 }
  0x83   :  { %v133_v21 = vmul.f32 0.5, %v129_v18 }
  0x84   :  { %v132_v22 = vmul.f32 0.5, %v128_v20 }
  0x85   :  { %v145_v27 = vadd.f32 %v141_v17, %v133_v21 }
  0x86   :  { %v144_v28 = vadd.f32 %v140_v19, %v132_v22 }
  0x87   :  { %v1255_v34 = vmul.f32 %v145_v27, %v116_v14 }
  0x88   :  { %v1257_v35 = vmul.f32 %v144_v28, %v111_v15  ;;  %v126_v39 = vpop.permute.xlu0 %125 }
  0x89   :  { %v121_v41 = vpop.permute.xlu1 %120  ;;  %v131_v42 = vmul.f32 %v126_v39, %v107_v32  ;;  %v186_v44 = vmul.f32 %v1255_v34, %v1255_v34 }
  0x8a   :  { %v130_v43 = vmul.f32 %v121_v41, %v106_v33  ;;  %v185_v45 = vmul.f32 %v1257_v35, %v1257_v35 }
  0x8b   :  { %v135_v48 = vmul.f32 0.5, %v131_v42  ;;  %v192_v50 = vsel %vm154_vm0, %v186_v44, 0.0 }
  0x8c   :  { %v134_v49 = vmul.f32 0.5, %v130_v43  ;;  %v189_v51 = vsel %vm154_vm0, %v185_v45, 0.0  ;;  %193 = vadd.xlane.f32.xlu0 %v192_v50 }
  0x8d   :  { %190 = vadd.xlane.f32.xlu2 %v189_v51  ;;  %v147_v53 = vadd.f32 %v143_v38, %v135_v48 }
  0x8e   :  { %v146_v54 = vadd.f32 %v142_v40, %v134_v49 }
  0x8f   :  { %v1267_v56 = vmul.f32 %v147_v53, %v126_v39 }
  0x90   :  { %v1269_v57 = vmul.f32 %v146_v54, %v121_v41 }
  0x91   :  { %v188_v59 = vmul.f32 %v1267_v56, %v1267_v56 }
  0x92   :  { %v187_v60 = vmul.f32 %v1269_v57, %v1269_v57 }
  0x93   :  { %v198_v62 = vsel %vm154_vm0, %v188_v59, 0.0 }
  0x94   :  { %v195_v63 = vsel %vm154_vm0, %v187_v60, 0.0  ;;  %199 = vadd.xlane.f32.xlu1 %v198_v62  ;;  %156 = vadd.xlane.f32.xlu0 %v155_v0 }
  0x95   :  { %196 = vadd.xlane.f32.xlu2 %v195_v63 }
  0x9c   :  { %159 = vadd.xlane.f32.xlu1 %v158_v2 }
  0xff   :  { %v194_v4 = vpop.xlane.xlu0 %193 }
 0x100   :  { %v191_v5 = vpop.xlane.xlu2 %190  ;;  %v202_v7 = vadd.f32 1e-26, %v194_v4 }
 0x101   :  { %v201_v8 = vadd.f32 1e-26, %v191_v5 }
 0x102   :  { %996 = vrsqrt.f32 %v202_v7  ;;  %vm221_vm2 = vweird.f32 %v202_v7 }
 0x103   :  { %998 = vrsqrt.f32 %v201_v8  ;;  %vm211_vm5 = vweird.f32 %v201_v8 }
 0x107   :  { %v200_v9 = vpop.xlane.xlu1 %199  ;;  %v157_v13 = vpop.xlane.xlu0 %156 }
 0x108   :  { %v197_v10 = vpop.xlane.xlu2 %196  ;;  %v997_v11 = vpop.eup %996  ;;  %v204_v12 = vadd.f32 1e-26, %v200_v9  ;;  %v161_v17 = vadd.f32 1e-26, %v157_v13 }
 0x109   :  { %v203_v14 = vadd.f32 1e-26, %v197_v10  ;;  %v999_v15 = vpop.eup %998  ;;  %v216_v16 = vmul.f32 %v997_v11, %v202_v7  ;;  %vm222_vm1 = vweird.f32 %v997_v11 }
 0x10a   :  { %v206_v18 = vmul.f32 %v999_v15, %v201_v8  ;;  %1000 = vrsqrt.f32 %v204_v12  ;;  %vm212_vm3 = vweird.f32 %v999_v15  ;;  %vm223_vm4 = vmor %vm221_vm2, %vm222_vm1  ;;  %vm241_vm8 = vweird.f32 %v204_v12 }
 0x10b   :  { %v217_v19 = vmul.f32 %v997_v11, %v216_v16  ;;  %1002 = vrsqrt.f32 %v161_v17  ;;  %vm213_vm6 = vmor %vm211_vm5, %vm212_vm3  ;;  %vm169_vm11 = vweird.f32 %v161_v17  ;;  %vm231_vm14 = vweird.f32 %v203_v14 }
 0x10c   :  { %v207_v20 = vmul.f32 %v999_v15, %v206_v18  ;;  %1004 = vrsqrt.f32 %v203_v14 }
 0x10d   :  { %v218_v21 = vmul.f32 0.5, %v217_v19 }
 0x10e   :  { %v208_v22 = vmul.f32 0.5, %v207_v20 }
 0x10f   :  { %v219_v23 = vsub.f32 1.5, %v218_v21  ;;  %v160_v24 = vpop.xlane.xlu1 %159 }
 0x110   :  { %v1001_v25 = vpop.eup %1000  ;;  %v209_v26 = vsub.f32 1.5, %v208_v22  ;;  %v162_v27 = vadd.f32 1e-26, %v160_v24  ;;  %v992_v24 = vld [vmem:[%s1545_s6] ss:$0 sm:$0xff] }
 0x111   :  { %v1003_v28 = vpop.eup %1002  ;;  %v236_v29 = vmul.f32 %v1001_v25, %v204_v12  ;;  %v220_v30 = vmul.f32 %v997_v11, %v219_v23  ;;  %vm242_vm7 = vweird.f32 %v1001_v25 }
 0x112   :  { %v1005_v31 = vpop.eup %1004  ;;  %v164_v32 = vmul.f32 %v1003_v28, %v161_v17  ;;  %1006 = vrsqrt.f32 %v162_v27  ;;  %v210_v40 = vmul.f32 %v999_v15, %v209_v26  ;;  %vm170_vm9 = vweird.f32 %v1003_v28  ;;  %vm243_vm12 = vmor %vm241_vm8, %vm242_vm7 }
 0x113   :  { %v237_v33 = vmul.f32 %v1001_v25, %v236_v29  ;;  %v226_v36 = vmul.f32 %v1005_v31, %v203_v14  ;;  %v224_v37 = vsel %vm223_vm4, %v997_v11, %v220_v30  ;;  %vm232_vm10 = vweird.f32 %v1005_v31  ;;  %vm171_vm13 = vmor %vm169_vm11, %vm170_vm9 }
 0x114   :  { %v165_v38 = vmul.f32 %v1003_v28, %v164_v32  ;;  %v246_v39 = vmul.f32 %v224_v37, %v1255_v34  ;;  %v214_v44 = vsel %vm213_vm6, %v999_v15, %v210_v40  ;;  %vm233_vm15 = vmor %vm231_vm14, %vm232_vm10  ;;  %vm179_vm2 = vweird.f32 %v162_v27 }
 0x115   :  { %v238_v41 = vmul.f32 0.5, %v237_v33  ;;  %v227_v42 = vmul.f32 %v1005_v31, %v226_v36  ;;  %v245_v49 = vmul.f32 %v214_v44, %v1257_v35  ;;  %vm351_vm4 = vcmask 7168  }
 0x116   :  { %v166_v43 = vmul.f32 0.5, %v165_v38  ;;  %953 = vmatpush.xpose.msk.msra.mxu0 %vm154_vm0, %v246_v39  ;;  %vm888_vm6 = vcmask 15360   ;;  %vm891_vm7 = vcmask 23552   ;;  %vm894_vm8 = vcmask 31744  }
 0x117   :  { %v239_v45 = vsub.f32 1.5, %v238_v41  ;;  %v228_v46 = vmul.f32 0.5, %v227_v42  ;;  %v993_v42 = vld [vmem:[%s1545_s6 + $0x1] ss:$0 sm:$0xff]  ;;  %vm897_vm9 = vcmask 39936   ;;  %vm900_vm10 = vcmask 48128  }
 0x118   :  { %v1007_v47 = vpop.eup %1006  ;;  %v167_v48 = vsub.f32 1.5, %v166_v43  ;;  %vm903_vm11 = vcmask 56320   ;;  %vm912_vm14 = vcmask 80896  }
 0x119   :  { %v229_v50 = vsub.f32 1.5, %v228_v46  ;;  %v174_v34 = vmul.f32 %v1007_v47, %v162_v27  ;;  %v240_v51 = vmul.f32 %v1001_v25, %v239_v45  ;;  %vm180_vm1 = vweird.f32 %v1007_v47 }
 0x11a   :  { %954 = vmatpush.xpose.msk.msra.mxu0 %vm154_vm0, %v245_v49  ;;  %v168_v53 = vmul.f32 %v1003_v28, %v167_v48  ;;  %vm181_vm3 = vmor %vm179_vm2, %vm180_vm1  ;;  %vm918_vm1 = vcmask 97280   ;;  %vm921_vm2 = vcmask 105472  }
 0x11b   :  { %v175_v54 = vmul.f32 %v1007_v47, %v174_v34  ;;  %v244_v55 = vsel %vm243_vm12, %v1001_v25, %v240_v51  ;;  %v230_v58 = vmul.f32 %v1005_v31, %v229_v50  ;;  %vm906_vm12 = vcmask 64512  }
 0x11c   :  { %v172_v59 = vsel %vm171_vm13, %v1003_v28, %v168_v53  ;;  %v248_v60 = vmul.f32 %v244_v55, %v1267_v56  ;;  %vm909_vm13 = vcmask 72704  }
 0x11d   :  { %v176_v62 = vmul.f32 0.5, %v175_v54  ;;  %v183_v35 = vmul.f32 %v172_v59, %v1265_v52  ;;  %v234_v63 = vsel %vm233_vm15, %v1005_v31, %v230_v58  ;;  %vm915_vm15 = vcmask 89088  }
 0x11e   :  { %956 = vmatpush.xpose.msk.msra.mxu1 %vm154_vm0, %v248_v60  ;;  %v247_v1 = vmul.f32 %v234_v63, %v1269_v57 }
 0x11f   :  { %v177_v0 = vsub.f32 1.5, %v176_v62  ;;  %955 = vmatmul.msk.f32.vlgmr.msra.gmra.mxu0 %vm154_vm0, %v183_v35 }
 0x121   :  { %v178_v2 = vmul.f32 %v1007_v47, %v177_v0 }
 0x122   :  { %957 = vmatpush.xpose.msk.msra.mxu1 %vm154_vm0, %v247_v1 }
 0x123   :  { %v182_v4 = vsel %vm181_vm3, %v1007_v47, %v178_v2  ;;  %vm927_vm3 = vcmask 121856  }
 0x124   :  { %v184_v56 = vmul.f32 %v182_v4, %v1277_v61 }
 0x126   :  { %958 = vmatmul.msk.f32.vlgmr.msra.gmra.mxu1 %vm154_vm0, %v184_v56  ;;  %vm325_vm0 = vcmask 130048  }
 0x19c   :  { %v275_v52 = vpop.f32.mrf.mxu0 }
 0x19d   :  { %v959_v5 = vadd.f32 -1.0, %v275_v52  ;;  %v961_v7 = vadd.f32 -1.110223e-16, %v275_v52 }
 0x19f   :  { %v309_v8 = vmul.f32 %v959_v5, %v959_v5  ;;  %v384_v9 = vmul.f32 %v961_v7, %v961_v7  ;;  %v394_v16 = vmul.f32 -14.0, %v961_v7  ;;  %v402_v19 = vmul.f32 14.0, %v961_v7 }
 0x1a1   :  { %v311_v10 = vmul.f32 -50000000.0, %v309_v8  ;;  %v386_v11 = vmul.f32 -24.5, %v384_v9  ;;  %v963_v25 = vadd.f32 -2.0, %v394_v16  ;;  %v965_v31 = vadd.f32 -2.0, %v402_v19 }
 0x1a3   :  { %v313_v12 = vmul.f32 1.442695, %v311_v10  ;;  %v388_v13 = vmul.f32 1.442695, %v386_v11  ;;  %v304_v57 = vpop.f32.mrf.mxu1  ;;  %v398_v38 = vmul.f32 1.442695, %v963_v25 }
 0x1a4   :  { %v960_v14 = vadd.f32 -1.0, %v304_v57  ;;  %v962_v15 = vadd.f32 -1.110223e-16, %v304_v57  ;;  %v406_v40 = vmul.f32 1.442695, %v965_v31 }
 0x1a5   :  { %1008 = vpow2.f32 %v313_v12 }
 0x1a6   :  { %1010 = vpow2.f32 %v388_v13  ;;  %v310_v17 = vmul.f32 %v960_v14, %v960_v14  ;;  %v385_v18 = vmul.f32 %v962_v15, %v962_v15  ;;  %v395_v61 = vmul.f32 -14.0, %v962_v15 }
 0x1a7   :  { %v403_v20 = vmul.f32 14.0, %v962_v15 }
 0x1a8   :  { %v312_v21 = vmul.f32 -50000000.0, %v310_v17  ;;  %v387_v22 = vmul.f32 -24.5, %v385_v18  ;;  %v964_v23 = vadd.f32 -2.0, %v395_v61 }
 0x1a9   :  { %v966_v26 = vadd.f32 -2.0, %v403_v20 }
 0x1aa   :  { %v315_v27 = vmul.f32 1.442695, %v312_v21  ;;  %v390_v28 = vmul.f32 1.442695, %v387_v22  ;;  %v400_v29 = vmul.f32 1.442695, %v964_v23 }
 0x1ab   :  { %v1009_v30 = vpop.eup %1008  ;;  %v408_v32 = vmul.f32 1.442695, %v966_v26  ;;  %v1143_v21 = vmov 0.6931472   ;;  %v994_v23 = vld [vmem:[%s1546_s7] ss:$0 sm:$0xff] }
 0x1ac   :  { %v1011_v33 = vpop.eup %1010  ;;  %1012 = vpow2.f32 %v315_v27  ;;  %v323_v36 = vmul.f32 %v1009_v30, %v992_v24  ;;  %v1323_v26 = vmul.f32 %v994_v23, %v1222_v3 }
 0x1ad   :  { %1014 = vpow2.f32 %v390_v28  ;;  %v392_v37 = vmul.f32 %v1011_v33, %v992_v24  ;;  %v995_v28 = vld [vmem:[%s1546_s7 + $0x1] ss:$0 sm:$0xff]  ;;  %s1144_s7 = smov 12  }
 0x1ae   :  { %1016 = vpow2.f32 %v400_v29  ;;  %v326_v39 = vsel %vm325_vm0, %v323_v36, 0.0 }
 0x1af   :  { %1018 = vpow2.f32 %v408_v32  ;;  %v410_v41 = vsel %vm325_vm0, %v392_v37, 0.0  ;;  %327 = vadd.xlane.f32.xlu2 %v326_v39  ;;  %v1333_v39 = vmul.f32 %v995_v28, %v1234_v6 }
 0x1b0   :  { %411 = vadd.xlane.f32.xlu1 %v410_v41  ;;  %1020 = vpow2.f32 %v398_v38 }
 0x1b1   :  { %1022 = vpow2.f32 %v406_v40 }
 0x1b2   :  { %v1013_v43 = vpop.eup %1012  ;;  %1024 = vrcp.f32 %v1143_v21 }
 0x1b3   :  { %v1015_v44 = vpop.eup %1014  ;;  %v324_v45 = vmul.f32 %v1013_v43, %v993_v42 }
 0x1b4   :  { %v1017_v46 = vpop.eup %1016  ;;  %v393_v47 = vmul.f32 %v1015_v44, %v993_v42 }
 0x1b5   :  { %v1019_v48 = vpop.eup %1018  ;;  %v329_v49 = vsel %vm325_vm0, %v324_v45, 0.0 }
 0x1b6   :  { %v413_v50 = vsel %vm325_vm0, %v393_v47, 0.0  ;;  %330 = vadd.xlane.f32.xlu0 %v329_v49  ;;  %v459_v34 = vmul.f32 %v1017_v46, %v393_v47  ;;  %v613_v51 = vmul.f32 %v1019_v48, %v393_v47  ;;  %v1021_v53 = vpop.eup %1020 }
 0x1b7   :  { %414 = vadd.xlane.f32.xlu2 %v413_v50  ;;  %v1023_v58 = vpop.eup %1022  ;;  %v458_v59 = vmul.f32 %v1021_v53, %v392_v37 }
 0x1b8   :  { %v463_v54 = vsel %vm325_vm0, %v459_v34, 0.0  ;;  %v663_v55 = vmul.f32 %v1019_v48, %v613_v51  ;;  %v612_v62 = vmul.f32 %v1023_v58, %v392_v37  ;;  %v617_v2 = vsel %vm325_vm0, %v613_v51, 0.0  ;;  %v1025_v22 = vpop.eup %1024 }
 0x1b9   :  { %464 = vadd.xlane.f32.xlu1 %v463_v54  ;;  %v460_v35 = vsel %vm325_vm0, %v458_v59, 0.0  ;;  %v508_v0 = vmul.f32 %v1021_v53, %v458_v59  ;;  %v509_v5 = vmul.f32 %v1017_v46, %v459_v34  ;;  %v339_v24 = vmul.f32 0.6931472, %v1025_v22 }
 0x1ba   :  { %v665_v60 = vmul.f32 0.01831564, %v663_v55  ;;  %v662_v1 = vmul.f32 %v1023_v58, %v612_v62  ;;  %v614_v52 = vsel %vm325_vm0, %v612_v62, 0.0  ;;  %vm343_vm5 = vweird.f32 %v1025_v22 }
 0x1bb   :  { %v510_v4 = vmul.f32 0.01831564, %v508_v0  ;;  %v511_v11 = vmul.f32 0.01831564, %v509_v5  ;;  %v340_v25 = vsub.f32 1.0, %v339_v24 }
 0x1bc   :  { %v669_v63 = vsel %vm325_vm0, %v665_v60, 0.0  ;;  %v664_v56 = vmul.f32 0.01831564, %v662_v1  ;;  %v715_v14 = vmul.f32 %v1019_v48, %v665_v60 }
 0x1bd   :  { %v512_v7 = vsel %vm325_vm0, %v510_v4, 0.0  ;;  %v560_v10 = vmul.f32 %v1021_v53, %v510_v4  ;;  %v515_v57 = vsel %vm325_vm0, %v511_v11, 0.0  ;;  %v561_v16 = vmul.f32 %v1017_v46, %v511_v11 }
 0x1be   :  { %461 = vadd.xlane.f32.xlu0 %v460_v35  ;;  %v714_v8 = vmul.f32 %v1023_v58, %v664_v56  ;;  %v666_v9 = vsel %vm325_vm0, %v664_v56, 0.0  ;;  %v717_v18 = vmul.f32 0.00033546262, %v715_v14  ;;  %v341_v29 = vmul.f32 %v1025_v22, %v340_v25 }
 0x1bf   :  { %670 = vadd.xlane.f32.xlu2 %v669_v63  ;;  %v562_v13 = vmul.f32 0.00033546262, %v560_v10  ;;  %v563_v61 = vmul.f32 0.00033546262, %v561_v16 }
 0x1c0   :  { %v716_v12 = vmul.f32 0.00033546262, %v714_v8  ;;  %v721_v19 = vsel %vm325_vm0, %v717_v18, 0.0  ;;  %v342_v40 = vadd.f32 %v1025_v22, %v341_v29 }
 0x1c1   :  { %618 = vadd.xlane.f32.xlu1 %v617_v2  ;;  %v564_v17 = vsel %vm325_vm0, %v562_v13, 0.0  ;;  %v567_v20 = vsel %vm325_vm0, %v563_v61, 0.0 }
 0x1c2   :  { %v718_v15 = vsel %vm325_vm0, %v716_v12, 0.0  ;;  %v1336_v50 = vsel %vm343_vm5, %v1025_v22, %v342_v40  ;;  %vm924_vm0 = vcmask 113664  }
 0x1c6   :  { %615 = vadd.xlane.f32.xlu0 %v614_v52 }
 0x1c7   :  { %513 = vadd.xlane.f32.xlu2 %v512_v7 }
 0x1c9   :  { %667 = vadd.xlane.f32.xlu1 %v666_v9 }
 0x1ce   :  { %516 = vadd.xlane.f32.xlu0 %v515_v57 }
 0x1cf   :  { %719 = vadd.xlane.f32.xlu2 %v718_v15 }
 0x1d1   :  { %565 = vadd.xlane.f32.xlu1 %v564_v17 }
 0x1d6   :  { %722 = vadd.xlane.f32.xlu0 %v721_v19 }
 0x1d7   :  { %568 = vadd.xlane.f32.xlu2 %v567_v20 }
 0x222   :  { %v328_v27 = vpop.xlane.xlu2 %327 }
 0x223   :  { %v412_v30 = vpop.xlane.xlu1 %411  ;;  %v332_v31 = vmax.f32 %v328_v27, 1e-10  ;;  %v366_v32 = vmul.f32 %v328_v27, %v1323_v26 }
 0x224   :  { %v442_v33 = vmul.f32 %v412_v30, %v1323_v26  ;;  %v416_v34 = vmax.f32 %v412_v30, 1e-10 }
 0x225   :  { %1026 = vlog2.f32 %v332_v31  ;;  %v368_v36 = vsel %vm351_vm4, %v366_v32, 0.0 }
 0x226   :  { %v444_v37 = vsel %vm351_vm4, %v442_v33, 0.0  ;;  %v369_v38 = vrot.slane %v368_v36, 4 }
 0x227   :  { %v445_v41 = vrot.slane %v444_v37, 4 }
 0x228   :  { %v370_v42 = vadd.f32 %v369_v38, %v368_v36 }
 0x229   :  { %v446_v43 = vadd.f32 %v445_v41, %v444_v37  ;;  %v331_v44 = vpop.xlane.xlu0 %330 }
 0x22a   :  { %v333_v45 = vmax.f32 %v331_v44, 1e-10  ;;  %v367_v46 = vmul.f32 %v331_v44, %v1333_v39  ;;  %v415_v47 = vpop.xlane.xlu2 %414  ;;  %v371_v48 = vrot.slane %v370_v42, 2 }
 0x22b   :  { %v1027_v49 = vpop.eup %1026  ;;  %v447_v51 = vrot.slane %v446_v43, 2  ;;  %v443_v54 = vmul.f32 %v415_v47, %v1333_v39  ;;  %v417_v60 = vmax.f32 %v415_v47, 1e-10 }
 0x22c   :  { %v335_v53 = vmul.f32 0.6931472, %v1027_v49  ;;  %1028 = vlog2.f32 %v333_v45  ;;  %v465_v55 = vpop.xlane.xlu1 %464  ;;  %v372_v58 = vadd.f32 %v371_v48, %v370_v42  ;;  %v375_v59 = vsel %vm351_vm4, %v367_v46, 0.0 }
 0x22d   :  { %v448_v35 = vadd.f32 %v447_v51, %v446_v43  ;;  %1030 = vlog2.f32 %v416_v34  ;;  %v376_v0 = vrot.slane %v375_v59, 4  ;;  %v451_v1 = vsel %vm351_vm4, %v443_v54, 0.0 }
 0x22e   :  { %v1341_v62 = vmul.f32 %v1336_v50, %v335_v53  ;;  %v373_v63 = vrot.slane %v372_v58, 1  ;;  %1032 = vlog2.f32 %v417_v60  ;;  %v493_v2 = vmul.f32 %v465_v55, %v1333_v39 }
 0x22f   :  { %v449_v7 = vrot.slane %v448_v35, 1  ;;  %v452_v9 = vrot.slane %v451_v1, 4  ;;  %v377_v10 = vadd.f32 %v376_v0, %v375_v59  ;;  %v467_v11 = vmax.f32 %v465_v55, 1e-10 }
 0x230   :  { %v374_v56 = vadd.f32 %v373_v63, %v372_v58  ;;  %v501_v57 = vsel %vm351_vm4, %v493_v2, 0.0 }
 0x231   :  { %v462_v4 = vpop.xlane.xlu0 %461  ;;  %v450_v17 = vadd.f32 %v449_v7, %v448_v35  ;;  %v453_v61 = vadd.f32 %v452_v9, %v451_v1  ;;  %1034 = vlog2.f32 %v467_v11  ;;  %v502_v20 = vrot.slane %v501_v57, 4 }
 0x232   :  { %v1029_v52 = vpop.eup %1028  ;;  %v671_v5 = vpop.xlane.xlu2 %670  ;;  %824 = vrot.lane.b32.xlu0 %v374_v56, %s1140_s14  ;;  %v466_v14 = vmax.f32 %v462_v4, 1e-10  ;;  %v492_v19 = vmul.f32 %v462_v4, %v1323_v26  ;;  %v378_v22 = vrot.slane %v377_v10, 2 }
 0x233   :  { %v337_v8 = vmul.f32 0.6931472, %v1029_v52  ;;  %v1031_v15 = vpop.eup %1030  ;;  %v673_v16 = vmax.f32 %v671_v5, 1e-10  ;;  %856 = vrot.lane.b32.xlu1 %v450_v17, %s1144_s7  ;;  %v699_v30 = vmul.f32 %v671_v5, %v1333_v39  ;;  %v454_v31 = vrot.slane %v453_v61, 2 }
 0x234   :  { %v619_v12 = vpop.xlane.xlu1 %618  ;;  %v1033_v18 = vpop.eup %1032  ;;  %v419_v23 = vmul.f32 0.6931472, %v1031_v15  ;;  %1036 = vlog2.f32 %v466_v14  ;;  %v379_v28 = vadd.f32 %v378_v22, %v377_v10  ;;  %v494_v29 = vsel %vm351_vm4, %v492_v19, 0.0 }
 0x235   :  { %v1347_v13 = vmul.f32 %v1336_v50, %v337_v8  ;;  %v647_v21 = vmul.f32 %v619_v12, %v1333_v39  ;;  %v421_v25 = vmul.f32 0.6931472, %v1033_v18  ;;  %1038 = vlog2.f32 %v673_v16 }
 0x236   :  { %v621_v27 = vmax.f32 %v619_v12, 1e-10  ;;  %v503_v32 = vadd.f32 %v502_v20, %v501_v57  ;;  %v380_v36 = vrot.slane %v379_v28, 1  ;;  %v422_v38 = vmul.f32 %v419_v23, %v1336_v50 }
 0x237   :  { %v655_v33 = vsel %vm351_vm4, %v647_v21, 0.0  ;;  %v1035_v42 = vpop.eup %1034  ;;  %v423_v43 = vmul.f32 %v421_v25, %v1336_v50  ;;  %v495_v44 = vrot.slane %v494_v29, 4  ;;  %v707_v47 = vsel %vm351_vm4, %v699_v30, 0.0 }
 0x238   :  { %1040 = vlog2.f32 %v621_v27  ;;  %v381_v45 = vadd.f32 %v380_v36, %v379_v28  ;;  %v656_v48 = vrot.slane %v655_v33, 4  ;;  %v504_v51 = vrot.slane %v503_v32, 2 }
 0x239   :  { %v616_v24 = vpop.xlane.xlu0 %615  ;;  %v455_v54 = vadd.f32 %v454_v31, %v453_v61  ;;  %v424_v58 = vmul.f32 0.01, %v422_v38  ;;  %v471_v59 = vmul.f32 0.6931472, %v1035_v42  ;;  %v425_v35 = vmul.f32 0.01, %v423_v43 }
 0x23a   :  { %v1356_v37 = vpop.xlane.xlu2 %513  ;;  %v620_v40 = vmax.f32 %v616_v24, 1e-10  ;;  %v1037_v46 = vpop.eup %1036  ;;  %826 = vrot.lane.b32.xlu2 %v381_v45, %s1140_s14  ;;  %v646_v53 = vmul.f32 %v616_v24, %v1323_v26  ;;  %v1366_v63 = vadd.f32 %v495_v44, %v494_v29  ;;  %v708_v0 = vrot.slane %v707_v47, 4  ;;  %s1145_s14 = smov 13  }
 0x23b   :  { %v518_v49 = vmax.f32 %v1356_v37, 1e-10  ;;  %v1039_v34 = vpop.eup %1038  ;;  %v456_v1 = vrot.slane %v455_v54, 1  ;;  %v469_v2 = vmul.f32 0.6931472, %v1037_v46  ;;  %v657_v56 = vadd.f32 %v656_v48, %v655_v33 }
 0x23c   :  { %v668_v41 = vpop.xlane.xlu1 %667  ;;  %1042 = vlog2.f32 %v620_v40  ;;  %v677_v4 = vmul.f32 0.6931472, %v1039_v34  ;;  %v648_v5 = vsel %vm351_vm4, %v646_v53, 0.0  ;;  %v505_v8 = vadd.f32 %v504_v51, %v503_v32 }
 0x23d   :  { %v672_v55 = vmax.f32 %v668_v41, 1e-10  ;;  %1044 = vlog2.f32 %v518_v49  ;;  %v457_v7 = vadd.f32 %v456_v1, %v455_v54  ;;  %v473_v9 = vmul.f32 %v471_v59, %v1336_v50 }
 0x23e   :  { %v1041_v52 = vpop.eup %1040  ;;  %v698_v10 = vmul.f32 %v668_v41, %v1323_v26  ;;  %v1372_v11 = vmul.f32 %v424_v58, %v1222_v3  ;;  %v709_v12 = vadd.f32 %v708_v0, %v707_v47  ;;  %v506_v57 = vrot.slane %v505_v8, 1 }
 0x23f   :  { %1046 = vlog2.f32 %v672_v55  ;;  %858 = vrot.lane.b32.xlu0 %v457_v7, %s1144_s7  ;;  %v472_v17 = vmul.f32 %v469_v2, %v1336_v50  ;;  %v679_v18 = vmul.f32 %v677_v4, %v1336_v50  ;;  %v625_v61 = vmul.f32 0.6931472, %v1041_v52 }
 0x240   :  { %v649_v19 = vrot.slane %v648_v5, 4  ;;  %v1381_v21 = vmul.f32 %v425_v35, %v1234_v6  ;;  %v497_v22 = vrot.slane %v1366_v63, 2  ;;  %v658_v23 = vrot.slane %v657_v56, 2 }
 0x241   :  { %v1364_v60 = vpop.xlane.xlu0 %516  ;;  %v507_v24 = vadd.f32 %v506_v57, %v505_v8  ;;  %v475_v27 = vmul.f32 0.01, %v473_v9  ;;  %v700_v28 = vsel %vm351_vm4, %v698_v10, 0.0  ;;  %v710_v31 = vrot.slane %v709_v12, 2 }
 0x242   :  { %v519_v14 = vmax.f32 %v1364_v60, 1e-10  ;;  %v720_v15 = vpop.xlane.xlu2 %719  ;;  %v1043_v16 = vpop.eup %1042  ;;  %v474_v38 = vmul.f32 0.01, %v472_v17  ;;  %v681_v40 = vmul.f32 0.01, %v679_v18  ;;  %v627_v41 = vmul.f32 %v625_v61, %v1336_v50 }
 0x243   :  { %v1045_v25 = vpop.eup %1044  ;;  %v724_v29 = vmax.f32 %v720_v15, 1e-10  ;;  %v623_v32 = vmul.f32 0.6931472, %v1043_v16  ;;  %866 = vrot.lane.b32.xlu1 %v507_v24, %s1145_s14  ;;  %v750_v33 = vmul.f32 %v720_v15, %v1323_v26  ;;  %v650_v42 = vadd.f32 %v649_v19, %v648_v5 }
 0x244   :  { %v1378_v20 = vpop.xlane.xlu1 %565  ;;  %1048 = vlog2.f32 %v519_v14  ;;  %v701_v44 = vrot.slane %v700_v28, 4  ;;  %v659_v46 = vadd.f32 %v658_v23, %v657_v56  ;;  %v521_v47 = vmul.f32 0.6931472, %v1045_v25 }
 0x245   :  { %v1047_v30 = vpop.eup %1046  ;;  %v570_v36 = vmax.f32 %v1378_v20, 1e-10  ;;  %v752_v45 = vsel %vm351_vm4, %v750_v33, 0.0  ;;  %v626_v34 = vmul.f32 %v623_v32, %v1336_v50  ;;  %v711_v53 = vadd.f32 %v710_v31, %v709_v12 }
 0x246   :  { %v675_v48 = vmul.f32 0.6931472, %v1047_v30  ;;  %v753_v49 = vrot.slane %v752_v45, 4  ;;  %v660_v51 = vrot.slane %v659_v46, 1  ;;  %v1392_v58 = vmul.f32 %v475_v27, %v1234_v6 }
 0x247   :  { %1050 = vlog2.f32 %v570_v36  ;;  %v1395_v59 = vmul.f32 %v474_v38, %v1222_v3  ;;  %v629_v35 = vmul.f32 0.01, %v627_v41  ;;  %v651_v1 = vrot.slane %v650_v42, 2 }
 0x248   :  { %1052 = vlog2.f32 %v724_v29  ;;  %v754_v0 = vadd.f32 %v753_v49, %v752_v45  ;;  %v702_v2 = vadd.f32 %v701_v44, %v700_v28  ;;  %v661_v4 = vadd.f32 %v660_v51, %v659_v46 }
 0x249   :  { %v723_v43 = vpop.xlane.xlu0 %722  ;;  %v712_v56 = vrot.slane %v711_v53, 1  ;;  %v1400_v5 = vmul.f32 %v681_v40, %v1234_v6  ;;  %v524_v7 = vmul.f32 %v521_v47, %v1336_v50  ;;  %v678_v8 = vmul.f32 %v675_v48, %v1336_v50 }
 0x24a   :  { %v725_v54 = vmax.f32 %v723_v43, 1e-10  ;;  %v1049_v55 = vpop.eup %1048  ;;  %v1397_v52 = vpop.xlane.xlu2 %568  ;;  %v628_v10 = vmul.f32 0.01, %v626_v34  ;;  %850 = vrot.lane.b32.xlu2 %v661_v4, %s1146_s20  ;;  %v751_v14 = vmul.f32 %v723_v43, %v1333_v39  ;;  %v631_v16 = vmul.f32 %v629_v35, %v1234_v6 }
 0x24b   :  { %v523_v12 = vmul.f32 0.6931472, %v1049_v55  ;;  %v713_v57 = vadd.f32 %v712_v56, %v711_v53  ;;  %v755_v17 = vrot.slane %v754_v0, 2  ;;  %v571_v61 = vmax.f32 %v1397_v52, 1e-10 }
 0x24c   :  { %1054 = vlog2.f32 %v725_v54  ;;  %v703_v19 = vrot.slane %v702_v2, 2  ;;  %v759_v23 = vsel %vm351_vm4, %v751_v14, 0.0  ;;  %v652_v24 = vadd.f32 %v651_v1, %v650_v42 }
 0x24d   :  { %v1051_v9 = vpop.eup %1050  ;;  %842 = vrot.lane.b32.xlu1 %v713_v57, %s1147_s21  ;;  %v498_v25 = vadd.f32 %v497_v22, %v1366_v63  ;;  %v526_v27 = vmul.f32 0.01, %v524_v7  ;;  %v680_v28 = vmul.f32 0.01, %v678_v8  ;;  %v760_v29 = vrot.slane %v759_v23, 4 }
 0x24e   :  { %v1053_v15 = vpop.eup %1052  ;;  %v573_v18 = vmul.f32 0.6931472, %v1051_v9  ;;  %1056 = vlog2.f32 %v571_v61  ;;  %v630_v6 = vmul.f32 %v628_v10, %v1222_v3  ;;  %v653_v31 = vrot.slane %v652_v24, 1 }
 0x24f   :  { %v727_v30 = vmul.f32 0.6931472, %v1053_v15  ;;  %v499_v32 = vrot.slane %v498_v25, 1  ;;  %v525_v36 = vmul.f32 %v523_v12, %v1336_v50  ;;  %v761_v40 = vadd.f32 %v760_v29, %v759_v23 }
 0x250   :  { %v576_v38 = vmul.f32 %v573_v18, %v1336_v50  ;;  %v756_v41 = vadd.f32 %v755_v17, %v754_v0  ;;  %v654_v43 = vadd.f32 %v653_v31, %v652_v24  ;;  %v704_v63 = vadd.f32 %v703_v19, %v702_v2  ;;  %v1435_v18 = vld [vmem:[%s1541_s2 + $0x8] sm:$0xff] }
 0x251   :  { %v500_v44 = vadd.f32 %v499_v32, %v498_v25  ;;  %v528_v22 = vmul.f32 %v526_v27, %v1222_v3  ;;  %v682_v45 = vmul.f32 %v680_v28, %v1222_v3  ;;  %v762_v46 = vrot.slane %v761_v40, 2 }
 0x252   :  { %v1055_v33 = vpop.eup %1054  ;;  %v757_v47 = vrot.slane %v756_v41, 1  ;;  %848 = vrot.lane.b32.xlu0 %v654_v43, %s1146_s20  ;;  %v705_v49 = vrot.slane %v704_v63, 1  ;;  %v435_v34 = vsel %vm351_vm4, %v1381_v21, 0.0  ;;  %v428_v51 = vsel %vm351_vm4, %v1372_v11, 0.0 }
 0x253   :  { %v729_v42 = vmul.f32 0.6931472, %v1055_v33  ;;  %864 = vrot.lane.b32.xlu2 %v500_v44, %s1145_s14  ;;  %v527_v54 = vmul.f32 0.01, %v525_v36  ;;  %v436_v35 = vrot.slane %v435_v34, 4  ;;  %v763_v3 = vadd.f32 %v762_v46, %v761_v40 }
 0x254   :  { %v1057_v53 = vpop.eup %1056  ;;  %v758_v55 = vadd.f32 %v757_v47, %v756_v41  ;;  %v1426_v0 = vmul.f32 %v727_v30, %v1336_v50  ;;  %v578_v1 = vmul.f32 0.01, %v576_v38  ;;  %v429_v4 = vrot.slane %v428_v51, 4 }
 0x255   :  { %v731_v48 = vmul.f32 %v729_v42, %v1336_v50  ;;  %v437_v56 = vadd.f32 %v436_v35, %v435_v34  ;;  %v764_v7 = vrot.slane %v763_v3, 1  ;;  %v632_v21 = vsel %vm351_vm4, %v630_v6, 0.0 }
 0x256   :  { %832 = vrot.lane.b32.xlu1 %v758_v55, %s1148_s22  ;;  %v639_v8 = vsel %vm351_vm4, %v631_v16, 0.0  ;;  %v575_v11 = vmul.f32 0.6931472, %v1057_v53  ;;  %v706_v9 = vadd.f32 %v705_v49, %v704_v63  ;;  %v430_v10 = vadd.f32 %v429_v4, %v428_v51 }
 0x257   :  { %v733_v2 = vmul.f32 0.01, %v731_v48  ;;  %v633_v12 = vrot.slane %v632_v21, 4  ;;  %v438_v57 = vrot.slane %v437_v56, 2  ;;  %v765_v14 = vadd.f32 %v764_v7, %v763_v3 }
 0x258   :  { %v640_v15 = vrot.slane %v639_v8, 4  ;;  %v485_v17 = vsel %vm351_vm4, %v1392_v58, 0.0  ;;  %v431_v19 = vrot.slane %v430_v10, 2  ;;  %v530_v27 = vsel %vm351_vm4, %v528_v22, 0.0 }
 0x259   :  { %v735_v61 = vmul.f32 %v1435_v18, %v733_v2  ;;  %v634_v23 = vadd.f32 %v633_v12, %v632_v21  ;;  %v486_v16 = vrot.slane %v485_v17, 4  ;;  %v439_v24 = vadd.f32 %v438_v57, %v437_v56 }
 0x25a   :  { %v641_v25 = vadd.f32 %v640_v15, %v639_v8  ;;  %v478_v28 = vsel %vm351_vm4, %v1395_v59, 0.0  ;;  %v577_v29 = vmul.f32 %v575_v11, %v1336_v50  ;;  %834 = vrot.lane.b32.xlu0 %v765_v14, %s1148_s22  ;;  %v432_v58 = vadd.f32 %v431_v19, %v430_v10  ;;  %v1447_v50 = vld [vmem:[%s1541_s2] sm:$0xff]  ;;  %s1150_s2 = smov 3  }
 0x25b   :  { %840 = vrot.lane.b32.xlu2 %v706_v9, %s1147_s21  ;;  %v635_v6 = vrot.slane %v634_v23, 2  ;;  %v487_v30 = vadd.f32 %v486_v16, %v485_v17  ;;  %v440_v31 = vrot.slane %v439_v24, 1  ;;  %v531_v33 = vrot.slane %v530_v27, 4 }
 0x25c   :  { %v642_v32 = vrot.slane %v641_v25, 2  ;;  %v479_v36 = vrot.slane %v478_v28, 4  ;;  %v433_v38 = vrot.slane %v432_v58, 1  ;;  %v684_v42 = vsel %vm351_vm4, %v682_v45, 0.0 }
 0x25d   :  { %v636_v40 = vadd.f32 %v635_v6, %v634_v23  ;;  %v488_v41 = vrot.slane %v487_v30, 2  ;;  %v441_v43 = vadd.f32 %v440_v31, %v439_v24  ;;  %v532_v59 = vadd.f32 %v531_v33, %v530_v27 }
 0x25e   :  { %v643_v44 = vadd.f32 %v642_v32, %v641_v25  ;;  %v480_v63 = vadd.f32 %v479_v36, %v478_v28  ;;  %v580_v22 = vmul.f32 %v1447_v50, %v578_v1  ;;  %v579_v46 = vmul.f32 0.01, %v577_v29 }
 0x25f   :  { %v489_v47 = vadd.f32 %v488_v41, %v487_v30  ;;  %v685_v48 = vrot.slane %v684_v42, 4  ;;  %794 = vrot.lane.b32.xlu1 %v441_v43, %s1149_s27  ;;  %v533_v34 = vrot.slane %v532_v59, 2  ;;  %v743_v45 = vsel %vm351_vm4, %v735_v61, 0.0 }
 0x260   :  { %v644_v49 = vrot.slane %v643_v44, 1  ;;  %v481_v51 = vrot.slane %v480_v63, 2  ;;  %v529_v53 = vmul.f32 %v1435_v18, %v527_v54  ;;  %v434_v55 = vadd.f32 %v433_v38, %v432_v58 }
 0x261   :  { %v686_v35 = vadd.f32 %v685_v48, %v684_v42  ;;  %v744_v3 = vrot.slane %v743_v45, 4  ;;  %v637_v2 = vrot.slane %v636_v40, 1  ;;  %v691_v1 = vsel %vm351_vm4, %v1400_v5, 0.0 }
 0x262   :  { %v645_v4 = vadd.f32 %v644_v49, %v643_v44  ;;  %v482_v56 = vadd.f32 %v481_v51, %v480_v63  ;;  %v732_v7 = vmul.f32 0.01, %v1426_v0  ;;  %v581_v21 = vmul.f32 %v1435_v18, %v579_v46 }
 0x263   :  { %792 = vrot.lane.b32.xlu2 %v434_v55, %s1149_s27  ;;  %v692_v8 = vrot.slane %v691_v1, 4  ;;  %v545_v11 = vmul.f32 %v1364_v60, %v1333_v39  ;;  %v490_v54 = vrot.slane %v489_v47, 1  ;;  %v534_v9 = vadd.f32 %v533_v34, %v532_v59 }
 0x264   :  { %786 = vrot.lane.b32.xlu0 %v645_v4, %s1150_s2  ;;  %v582_v10 = vsel %vm351_vm4, %v580_v22, 0.0  ;;  %v687_v12 = vrot.slane %v686_v35, 2  ;;  %v745_v57 = vadd.f32 %v744_v3, %v743_v45  ;;  %v638_v5 = vadd.f32 %v637_v2, %v636_v40 }
 0x265   :  { %v693_v14 = vadd.f32 %v692_v8, %v691_v1  ;;  %v583_v15 = vrot.slane %v582_v10, 4  ;;  %v483_v17 = vrot.slane %v482_v56, 1  ;;  %v537_v0 = vsel %vm351_vm4, %v529_v53, 0.0 }
 0x266   :  { %v734_v61 = vmul.f32 %v1447_v50, %v732_v7  ;;  %v589_v23 = vsel %vm351_vm4, %v581_v21, 0.0  ;;  %v553_v60 = vsel %vm351_vm4, %v545_v11, 0.0  ;;  %v596_v16 = vmul.f32 %v1378_v20, %v1323_v26 }
 0x267   :  { %v694_v19 = vrot.slane %v693_v14, 2  ;;  %784 = vrot.lane.b32.xlu1 %v638_v5, %s1150_s2  ;;  %v491_v24 = vadd.f32 %v490_v54, %v489_v47  ;;  %v538_v25 = vrot.slane %v537_v0, 4  ;;  %v535_v27 = vrot.slane %v534_v9, 1 }
 0x268   :  { %v688_v28 = vadd.f32 %v687_v12, %v686_v35  ;;  %v746_v29 = vrot.slane %v745_v57, 2  ;;  %v584_v58 = vadd.f32 %v583_v15, %v582_v10  ;;  %v484_v6 = vadd.f32 %v483_v17, %v482_v56 }
 0x269   :  { %v695_v30 = vadd.f32 %v694_v19, %v693_v14  ;;  %v590_v31 = vrot.slane %v589_v23, 4  ;;  %v539_v32 = vadd.f32 %v538_v25, %v537_v0  ;;  %v736_v33 = vsel %vm351_vm4, %v734_v61, 0.0 }
 0x26a   :  { %v544_v36 = vmul.f32 %v1356_v37, %v1323_v26  ;;  %v554_v38 = vrot.slane %v553_v60, 4  ;;  %v598_v20 = vsel %vm351_vm4, %v596_v16, 0.0  ;;  %v536_v40 = vadd.f32 %v535_v27, %v534_v9 }
 0x26b   :  { %802 = vrot.lane.b32.xlu2 %v491_v24, %s1151_s28  ;;  %v689_v41 = vrot.slane %v688_v28, 1  ;;  %v747_v42 = vadd.f32 %v746_v29, %v745_v57  ;;  %v585_v43 = vrot.slane %v584_v58, 2  ;;  %v696_v44 = vrot.slane %v695_v30, 1 }
 0x26c   :  { %800 = vrot.lane.b32.xlu0 %v484_v6, %s1151_s28  ;;  %v591_v59 = vadd.f32 %v590_v31, %v589_v23  ;;  %v540_v63 = vrot.slane %v539_v32, 2  ;;  %v737_v22 = vrot.slane %v736_v33, 4  ;;  %v546_v46 = vsel %vm351_vm4, %v544_v36, 0.0 }
 0x26d   :  { %v555_v47 = vadd.f32 %v554_v38, %v553_v60  ;;  %v599_v48 = vrot.slane %v598_v20, 4  ;;  %v690_v26 = vadd.f32 %v689_v41, %v688_v28  ;;  %v748_v37 = vrot.slane %v747_v42, 1 }
 0x26e   :  { %v586_v49 = vadd.f32 %v585_v43, %v584_v58  ;;  %v697_v34 = vadd.f32 %v696_v44, %v695_v30  ;;  %v592_v51 = vrot.slane %v591_v59, 2  ;;  %v541_v45 = vadd.f32 %v540_v63, %v539_v32 }
 0x26f   :  { %808 = vrot.lane.b32.xlu1 %v536_v40, %s1152_s29  ;;  %v738_v53 = vadd.f32 %v737_v22, %v736_v33  ;;  %v547_v55 = vrot.slane %v546_v46, 4  ;;  %v556_v35 = vrot.slane %v555_v47, 2  ;;  %v600_v3 = vadd.f32 %v599_v48, %v598_v20 }
 0x270   :  { %v587_v2 = vrot.slane %v586_v49, 1  ;;  %v749_v4 = vadd.f32 %v748_v37, %v747_v42  ;;  %v593_v56 = vadd.f32 %v592_v51, %v591_v59  ;;  %v542_v1 = vrot.slane %v541_v45, 1 }
 0x271   :  { %v739_v7 = vrot.slane %v738_v53, 2  ;;  %v597_v21 = vmul.f32 %v1397_v52, %v1333_v39  ;;  %v548_v8 = vadd.f32 %v547_v55, %v546_v46  ;;  %v557_v54 = vadd.f32 %v556_v35, %v555_v47 }
 0x272   :  { %v588_v11 = vadd.f32 %v587_v2, %v586_v49  ;;  %v601_v9 = vrot.slane %v600_v3, 2  ;;  %v594_v10 = vrot.slane %v593_v56, 1  ;;  %v543_v12 = vadd.f32 %v542_v1, %v541_v45 }
 0x273   :  { %776 = vrot.lane.b32.xlu2 %v690_v26, %s1153_s30  ;;  %v740_v57 = vadd.f32 %v739_v7, %v738_v53  ;;  %v605_v14 = vsel %vm351_vm4, %v597_v21, 0.0  ;;  %v549_v15 = vrot.slane %v548_v8, 2  ;;  %v558_v5 = vrot.slane %v557_v54, 1 }
 0x274   :  { %778 = vrot.lane.b32.xlu0 %v697_v34, %s1153_s30  ;;  %v606_v17 = vrot.slane %v605_v14, 4  ;;  %v595_v39 = vadd.f32 %v594_v10, %v593_v56  ;;  %v602_v52 = vadd.f32 %v601_v9, %v600_v3  ;;  %v348_v43 = vmul.f32 0.01, %v1347_v13 }
 0x275   :  { %v741_v0 = vrot.slane %v740_v57, 1  ;;  %v559_v61 = vadd.f32 %v558_v5, %v557_v54  ;;  %v550_v16 = vadd.f32 %v549_v15, %v548_v8  ;;  %v347_v48 = vmul.f32 0.01, %v1341_v62 }
 0x276   :  { %v607_v19 = vadd.f32 %v606_v17, %v605_v14  ;;  %v603_v23 = vrot.slane %v602_v52, 1  ;;  %v350_v59 = vmul.f32 %v1435_v18, %v348_v43 }
 0x277   :  { %770 = vrot.lane.b32.xlu1 %v749_v4, %s1154_s5  ;;  %v742_v60 = vadd.f32 %v741_v0, %v740_v57  ;;  %v551_v27 = vrot.slane %v550_v16, 1  ;;  %v349_v49 = vmul.f32 %v1447_v50, %v347_v48 }
 0x278   :  { %v608_v24 = vrot.slane %v607_v19, 2  ;;  %v604_v25 = vadd.f32 %v603_v23, %v602_v52  ;;  %v359_v63 = vsel %vm351_vm4, %v350_v59, 0.0 }
 0x279   :  { %v552_v28 = vadd.f32 %v551_v27, %v550_v16  ;;  %v360_v47 = vrot.slane %v359_v63, 4  ;;  %v352_v13 = vsel %vm351_vm4, %v349_v49, 0.0 }
 0x27a   :  { %v609_v29 = vadd.f32 %v608_v24, %v607_v19  ;;  %v353_v55 = vrot.slane %v352_v13, 4 }
 0x27b   :  { %816 = vrot.lane.b32.xlu2 %v588_v11, %s1155_s9  ;;  %v361_v37 = vadd.f32 %v360_v47, %v359_v63 }
 0x27c   :  { %810 = vrot.lane.b32.xlu0 %v543_v12, %s1152_s29  ;;  %v610_v58 = vrot.slane %v609_v29, 1  ;;  %v354_v2 = vadd.f32 %v353_v55, %v352_v13 }
 0x27d   :  { %v362_v45 = vrot.slane %v361_v37, 2 }
 0x27e   :  { %v611_v6 = vadd.f32 %v610_v58, %v609_v29  ;;  %v355_v62 = vrot.slane %v354_v2, 2 }
 0x27f   :  { %818 = vrot.lane.b32.xlu1 %v595_v39, %s1155_s9  ;;  %v363_v18 = vadd.f32 %v362_v45, %v361_v37 }
 0x280   :  { %v356_v11 = vadd.f32 %v355_v62, %v354_v2 }
 0x281   :  { %v364_v3 = vrot.slane %v363_v18, 1 }
 0x282   :  { %v357_v14 = vrot.slane %v356_v11, 1 }
 0x283   :  { %874 = vrot.lane.b32.xlu2 %v559_v61, %s1156_s10  ;;  %v365_v1 = vadd.f32 %v364_v3, %v363_v18 }
 0x284   :  { %768 = vrot.lane.b32.xlu0 %v742_v60, %s1154_s5  ;;  %v358_v52 = vadd.f32 %v357_v14, %v356_v11 }
 0x287   :  { %880 = vrot.lane.b32.xlu1 %v604_v25, %s1157_s11 }
 0x28c   :  { %872 = vrot.lane.b32.xlu0 %v552_v28, %s1156_s10 }
 0x294   :  { %882 = vrot.lane.b32.xlu0 %v611_v6, %s1157_s11  ;;  %v827_v33 = vpop.permute.xlu2 %826 }
 0x2a4   :  { %v1479_v31 = vpop.permute.xlu0 %824  ;;  %v851_v38 = vpop.permute.xlu2 %850 }
 0x2a5   :  { %v1477_v30 = vpop.permute.xlu1 %856 }
 0x2ad   :  { %v1489_v42 = vpop.permute.xlu2 %864 }
 0x2b1   :  { %v1483_v36 = vpop.permute.xlu0 %858 }
 0x2b5   :  { %v1481_v32 = vpop.permute.xlu1 %866  ;;  %v1494_v46 = vpop.permute.xlu2 %840 }
 0x2bd   :  { %v793_v51 = vpop.permute.xlu2 %792 }
 0x2bf   :  { %v843_v20 = vpop.permute.xlu1 %842 }
 0x2c4   :  { %v1485_v40 = vpop.permute.xlu0 %848 }
 0x2c5   :  { %v803_v56 = vpop.permute.xlu2 %802 }
 0x2c8   :  { %v1487_v41 = vpop.permute.xlu1 %832 }
 0x2cc   :  { %v835_v44 = vpop.permute.xlu0 %834 }
 0x2cd   :  { %v777_v57 = vpop.permute.xlu2 %776 }
 0x2d1   :  { %v795_v22 = vpop.permute.xlu1 %794 }
 0x2d5   :  { %v817_v28 = vpop.permute.xlu2 %816 }
 0x2d6   :  { %v787_v26 = vpop.permute.xlu0 %786 }
 0x2d9   :  { %v785_v34 = vpop.permute.xlu1 %784 }
 0x2dd   :  { %v875_v59 = vpop.permute.xlu2 %874 }
 0x2de   :  { %v801_v53 = vpop.permute.xlu0 %800 }
 0x2e1   :  { %v809_v35 = vpop.permute.xlu1 %808 }
 0x2e6   :  { %v779_v4 = vpop.permute.xlu0 %778 }
 0x2e9   :  { %v771_v7 = vpop.permute.xlu1 %770 }
 0x2ea   :  { %v887_v50 = vsel %vm351_vm4, %v365_v1, %v771_v7 }
 0x2eb   :  { %v890_v21 = vsel %vm888_vm6, %v887_v50, %v779_v4 }
 0x2ec   :  { %v893_v8 = vsel %vm891_vm7, %v890_v21, %v787_v26 }
 0x2ed   :  { %v896_v54 = vsel %vm894_vm8, %v893_v8, %v795_v22 }
 0x2ee   :  { %v811_v9 = vpop.permute.xlu0 %810  ;;  %v899_v10 = vsel %vm897_vm9, %v896_v54, %v803_v56 }
 0x2ef   :  { %v902_v12 = vsel %vm900_vm10, %v899_v10, %v811_v9 }
 0x2f1   :  { %v819_v15 = vpop.permute.xlu1 %818 }
 0x2f2   :  { %v905_v5 = vsel %vm903_vm11, %v902_v12, %v819_v15 }
 0x2f3   :  { %v908_v17 = vsel %vm906_vm12, %v905_v5, %v827_v33 }
 0x2f4   :  { %v911_v39 = vsel %vm909_vm13, %v908_v17, %v835_v44 }
 0x2f5   :  { %v914_v0 = vsel %vm912_vm14, %v911_v39, %v843_v20 }
 0x2f6   :  { %v769_v61 = vpop.permute.xlu0 %768  ;;  %v917_v23 = vsel %vm915_vm15, %v914_v0, %v851_v38 }
 0x2f7   :  { %v886_v19 = vsel %vm351_vm4, %v358_v52, %v769_v61  ;;  %v920_v16 = vsel %vm918_vm1, %v917_v23, %v1483_v36  ;;  %vm930_vm4 = vcmask 122880  }
 0x2f8   :  { %v889_v60 = vsel %vm888_vm6, %v886_v19, %v777_v57  ;;  %v923_v25 = vsel %vm921_vm2, %v920_v16, %v1481_v32 }
 0x2f9   :  { %v892_v24 = vsel %vm891_vm7, %v889_v60, %v785_v34 }
 0x2fa   :  { %v895_v27 = vsel %vm894_vm8, %v892_v24, %v793_v51 }
 0x2fb   :  { %v898_v29 = vsel %vm897_vm9, %v895_v27, %v801_v53 }
 0x2fc   :  { %v901_v58 = vsel %vm900_vm10, %v898_v29, %v809_v35 }
 0x2fd   :  { %v904_v6 = vsel %vm903_vm11, %v901_v58, %v817_v28 }
 0x2fe   :  { %v907_v33 = vsel %vm906_vm12, %v904_v6, %v1479_v31  ;;  %v873_v38 = vpop.permute.xlu0 %872 }
 0x2ff   :  { %v910_v36 = vsel %vm909_vm13, %v907_v33, %v1487_v41  ;;  %v881_v41 = vpop.permute.xlu1 %880 }
 0x300   :  { %v913_v20 = vsel %vm912_vm14, %v910_v36, %v1494_v46 }
 0x301   :  { %v916_v32 = vsel %vm915_vm15, %v913_v20, %v1485_v40 }
 0x302   :  { %v919_v43 = vsel %vm918_vm1, %v916_v32, %v1477_v30  ;;  %v926_v30 = vsel %vm924_vm0, %v923_v25, %v875_v59 }
 0x303   :  { %v922_v31 = vsel %vm921_vm2, %v919_v43, %v1489_v42 }
 0x304   :  { %v925_v44 = vsel %vm924_vm0, %v922_v31, %v873_v38 }
 0x305   :  { %v928_v40 = vsel %vm927_vm3, %v925_v44, %v881_v41 }
 0x306   :  { %931 = vst.msk [vmem:[#allocation7] sm:$0x1] %vm930_vm4, %v928_v40  ;;  %v883_v63 = vpop.permute.xlu0 %882 }
 0x307   :  { %v929_v22 = vsel %vm927_vm3, %v926_v30, %v883_v63 }
 0x308   :  { %932 = vst.msk [vmem:[#allocation7 + $0x1] sm:$0x1] %vm930_vm4, %v929_v22 }
 0x309   :  { %945 = dma.vmem_to_hbm [thread:$0]  %s938_s0, 32, %s940_s15, [#allocation4], %s1159_s8, %s1159_s8, %s1154_s5  }
 0x30a   :  { %1136 = dma.done.wait [#allocation4], 32  }
 0x30b   :  { %1137 = vsyncadd [#allocation4], 4294967264 }
 0x30c   :  { %950 = vsyncpa [#allocation3], 1 }
 0x30d   :  { %951 = vsyncpa [#allocation6], 1 }
 0x30e   :  { %952 = vsyncpa [#allocation4], 1 }

</bundles_post_ra>
